<compile_context>
chip_gen: v7x
topology: tpu7x:2x2x1
jax: 0.10.0
libtpu: 0.0.40
codegen_flags: <defaults>
</compile_context>

<pallas_src>
import jax
import jax.numpy as jnp
from jax.experimental import pallas as pl
from jax.experimental.pallas import tpu as pltpu


def fc_kernel(x_ref, w1_ref, b1_ref, w2_ref, b2_ref, o_ref):
    # Cast x in-kernel: HBM stream stays a single f32 (or bf16) read; the MXU
    # sees bf16 operands with f32 accumulation.
    x_bf = x_ref[...].astype(jnp.bfloat16)
    # fc1: [TB, 1024](bf16) @ [1024, 32](bf16) -> f32 accumulate on the MXU.
    h = jnp.dot(x_bf, w1_ref[...], preferred_element_type=jnp.float32)
    # Bias + sigmoid in f32 (exp/recip hit the EUP slot).
    h = jax.nn.sigmoid(h + b1_ref[...])
    # fc2: [TB, 32] @ [32, 128] (lane-dense padded output), f32, + bias.
    out = jnp.dot(h, w2_ref[...], preferred_element_type=jnp.float32)
    o_ref[...] = (out + b2_ref[...]).astype(o_ref.dtype)


def fc_forward(x, w1, b1, w2, b2, *, tb=1024, padded_out=False):
    """y = sigmoid(x @ w1 + b1) @ w2 + b2.

    x : [B, 1024] f32 (or bf16), w1: [1024, 32], b1: [1, 32],
    w2: [32, 36], b2: [1, 36]
    """
    B, K = x.shape
    H = w1.shape[1]          # 32
    N = w2.shape[1]          # 36
    N_PAD = 128              # lane-dense output width

    # Tiny constant-size prep (few KiB): pad fc2 weights/bias to 128 lanes,
    # hold w1 in bf16 (VMEM-resident across the whole grid).
    w2_p = jnp.zeros((H, N_PAD), jnp.float32).at[:, :N].set(w2.astype(jnp.float32))
    b2_p = jnp.zeros((1, N_PAD), jnp.float32).at[:, :N].set(b2.astype(jnp.float32))
    w1_bf = w1.astype(jnp.bfloat16)

    # Batch tile: multiple of 8 sublanes, capped so the grid has >= 2 steps
    # whenever B allows (v7x megacore), and capped at tb (default 1024 keeps
    # the double-buffered x tile at 8 MiB f32 -> fits all generations).
    half = -(-B // 2)
    tb = max(8, min(tb, ((half + 7) // 8) * 8))
    grid = (-(-B // tb),)    # ragged last block handled by Pallas

    out = pl.pallas_call(
        fc_kernel,
        out_shape=jax.ShapeDtypeStruct((B, N_PAD), jnp.float32),
        grid=grid,
        in_specs=[
            pl.BlockSpec((tb, K), lambda i: (i, 0)),       # x: tiled, pipelined
            pl.BlockSpec((K, H), lambda i: (0, 0)),        # w1: VMEM-resident
            pl.BlockSpec((1, H), lambda i: (0, 0)),        # b1: VMEM-resident
            pl.BlockSpec((H, N_PAD), lambda i: (0, 0)),    # w2 (padded): resident
            pl.BlockSpec((1, N_PAD), lambda i: (0, 0)),    # b2 (padded): resident
        ],
        out_specs=pl.BlockSpec((tb, N_PAD), lambda i: (i, 0)),
        compiler_params=pltpu.CompilerParams(
            dimension_semantics=("parallel",),
            vmem_limit_bytes=48 * 1024 * 1024,   # covers tb up to ~2048 f32; <= v7x budget
        ),
    )(x, w1_bf, b1, w2_p, b2_p)

    if padded_out:
        # Columns N..127 are exact zeros; all B rows are valid.
        return out
    return out[:, :N]


def init_params(key):
    # Deterministic init mimicking nn.Linear default: U(-1/sqrt(fan_in), +1/sqrt(fan_in))
    k1, k2, k3, k4 = jax.random.split(key, 4)
    in1, out1 = 1024, 32
    in2, out2 = 32, 36
    bound1 = 1.0 / jnp.sqrt(in1)
    bound2 = 1.0 / jnp.sqrt(in2)
    w1 = jax.random.uniform(k1, (in1, out1), jnp.float32, -bound1, bound1)
    b1 = jax.random.uniform(k2, (1, out1), jnp.float32, -bound1, bound1)
    w2 = jax.random.uniform(k3, (in2, out2), jnp.float32, -bound2, bound2)
    b2 = jax.random.uniform(k4, (1, out2), jnp.float32, -bound2, bound2)
    return w1, b1, w2, b2


if __name__ == "__main__":
    key = jax.random.PRNGKey(0)
    kx, kp = jax.random.split(key)

    # batch=250: tb clamps to 128 -> 2-step grid (megacore-shardable on v7x)
    # and exercises the ragged last block (122 valid rows, 6 dropped).
    batch = 250
    x = jax.random.normal(kx, (batch, 1024), jnp.float32)
    w1, b1, w2, b2 = init_params(kp)

    out = fc_forward(x, w1, b1, w2, b2)
    jax.block_until_ready(out)
    assert out.shape == (batch, 36)

    # Reference in plain JAX using the same bf16-rounded x/w1 the kernel sees.
    x_r = x.astype(jnp.bfloat16).astype(jnp.float32)
    w1_r = w1.astype(jnp.bfloat16).astype(jnp.float32)
    ref = jax.nn.sigmoid(x_r @ w1_r + b1) @ w2 + b2
    assert jnp.allclose(out, ref, atol=2e-3, rtol=2e-3)

    print("KERNEL_OK")
</pallas_src>

<mosaic_0001>
module attributes {stable_mosaic.version = 11 : i64} {
  func.func @fc_kernel(%arg0: i32, %arg1: memref<128x1024xf32, #tpu.memory_space<vmem>>, %arg2: memref<1024x32xbf16, #tpu.memory_space<vmem>>, %arg3: memref<1x32xf32, #tpu.memory_space<vmem>>, %arg4: memref<32x128xf32, #tpu.memory_space<vmem>>, %arg5: memref<1x128xf32, #tpu.memory_space<vmem>>, %arg6: memref<128x128xf32, #tpu.memory_space<vmem>>) attributes {dimension_semantics = [#tpu.dimension_semantics<parallel>], iteration_bounds = array<i64: 2>, scalar_prefetch = 0 : i64, scratch_operands = 0 : i64, tpu.core_type = #tpu.core_type<tc>, window_params = [{transform_indices = @transform_0, window_bounds = array<i64: 128, 1024>}, {pipeline_mode = #tpu.pipeline_mode<synchronous>, transform_indices = @transform_1, window_bounds = array<i64: 1024, 32>}, {pipeline_mode = #tpu.pipeline_mode<synchronous>, transform_indices = @transform_2, window_bounds = array<i64: 1, 32>}, {pipeline_mode = #tpu.pipeline_mode<synchronous>, transform_indices = @transform_3, window_bounds = array<i64: 32, 128>}, {pipeline_mode = #tpu.pipeline_mode<synchronous>, transform_indices = @transform_4, window_bounds = array<i64: 1, 128>}, {transform_indices = @transform_5, window_bounds = array<i64: 128, 128>}]} {
    %c0 = arith.constant 0 : index
    %c0_0 = arith.constant 0 : index
    %0 = vector.load %arg1[%c0, %c0_0] : memref<128x1024xf32, #tpu.memory_space<vmem>>, vector<128x1024xf32>
    %1 = arith.truncf %0 : vector<128x1024xf32> to vector<128x1024xbf16>
    %c0_1 = arith.constant 0 : index
    %c0_2 = arith.constant 0 : index
    %2 = vector.load %arg2[%c0_1, %c0_2] : memref<1024x32xbf16, #tpu.memory_space<vmem>>, vector<1024x32xbf16>
    %cst = arith.constant dense<0.000000e+00> : vector<128x32xf32>
    %3 = tpu.matmul %1, %2, %cst {dimension_numbers = #tpu.dot_dimension_numbers<[1], [0], [0], [1], [0, 0, 1, 1], [], []>} : vector<128x1024xbf16>, vector<1024x32xbf16>, vector<128x32xf32> -> vector<128x32xf32>
    %c0_3 = arith.constant 0 : index
    %c0_4 = arith.constant 0 : index
    %4 = vector.load %arg3[%c0_3, %c0_4] : memref<1x32xf32, #tpu.memory_space<vmem>>, vector<1x32xf32>
    %5 = vector.broadcast %4 : vector<1x32xf32> to vector<128x32xf32>
    %6 = arith.addf %3, %5 : vector<128x32xf32>
    %7 = arith.negf %6 : vector<128x32xf32>
    %8 = math.exp %7 : vector<128x32xf32>
    %cst_5 = arith.constant 1.000000e+00 : f32
    %9 = vector.broadcast %cst_5 : f32 to vector<128x32xf32>
    %10 = arith.addf %9, %8 : vector<128x32xf32>
    %11 = arith.divf %9, %10 : vector<128x32xf32>
    %c0_6 = arith.constant 0 : index
    %c0_7 = arith.constant 0 : index
    %12 = vector.load %arg4[%c0_6, %c0_7] : memref<32x128xf32, #tpu.memory_space<vmem>>, vector<32x128xf32>
    %cst_8 = arith.constant dense<0.000000e+00> : vector<128x128xf32>
    %13 = tpu.matmul %11, %12, %cst_8 {dimension_numbers = #tpu.dot_dimension_numbers<[1], [0], [0], [1], [0, 0, 1, 1], [], []>} : vector<128x32xf32>, vector<32x128xf32>, vector<128x128xf32> -> vector<128x128xf32>
    %c0_9 = arith.constant 0 : index
    %c0_10 = arith.constant 0 : index
    %14 = vector.load %arg5[%c0_9, %c0_10] : memref<1x128xf32, #tpu.memory_space<vmem>>, vector<1x128xf32>
    %15 = vector.broadcast %14 : vector<1x128xf32> to vector<128x128xf32>
    %16 = arith.addf %13, %15 : vector<128x128xf32>
    %c0_11 = arith.constant 0 : index
    %c0_12 = arith.constant 0 : index
    %17 = vector.load %arg6[%c0_11, %c0_12] : memref<128x128xf32, #tpu.memory_space<vmem>>, vector<128x128xf32>
    tpu.vector_store %arg6[%c0_11, %c0_12], %16 {strides = array<i32>} : memref<128x128xf32, #tpu.memory_space<vmem>>, vector<128x128xf32>,
    return
  }
  func.func @transform_0(%arg0: i32) -> (i32, i32) {
    %c0_i32 = arith.constant 0 : i32
    %c0_i32_0 = arith.constant 0 : i32
    return %arg0, %c0_i32 : i32, i32
  }
  func.func @transform_1(%arg0: i32) -> (i32, i32) {
    %c0_i32 = arith.constant 0 : i32
    %c0_i32_0 = arith.constant 0 : i32
    %c0_i32_1 = arith.constant 0 : i32
    return %c0_i32, %c0_i32_0 : i32, i32
  }
  func.func @transform_2(%arg0: i32) -> (i32, i32) {
    %c0_i32 = arith.constant 0 : i32
    %c0_i32_0 = arith.constant 0 : i32
    %c0_i32_1 = arith.constant 0 : i32
    return %c0_i32, %c0_i32_0 : i32, i32
  }
  func.func @transform_3(%arg0: i32) -> (i32, i32) {
    %c0_i32 = arith.constant 0 : i32
    %c0_i32_0 = arith.constant 0 : i32
    %c0_i32_1 = arith.constant 0 : i32
    return %c0_i32, %c0_i32_0 : i32, i32
  }
  func.func @transform_4(%arg0: i32) -> (i32, i32) {
    %c0_i32 = arith.constant 0 : i32
    %c0_i32_0 = arith.constant 0 : i32
    %c0_i32_1 = arith.constant 0 : i32
    return %c0_i32, %c0_i32_0 : i32, i32
  }
  func.func @transform_5(%arg0: i32) -> (i32, i32) {
    %c0_i32 = arith.constant 0 : i32
    %c0_i32_0 = arith.constant 0 : i32
    return %arg0, %c0_i32 : i32, i32
  }
}

</mosaic_0001>

<bundles_post_ra>
// kernel: tpu_custom_call.1
= control target key start
LH: loop header
LB: loop body
LE: loop exit
PB: predicated region body
PF: predicated region fallthrough
CT: control target
= control target key end

     0   :  { %10 = vsyncpa [#allocation3], 0  ;;  %s3102_s0 = inlined_call_operand.hbm [shape: f32[250,1024], index: 0, kind: input, shape index: {}]   ;;  %s3103_s1 = inlined_call_operand.vmem [shape: bf16[1024,32], index: 1, kind: input, shape index: {}]   ;;  %s3104_s2 = inlined_call_operand.vmem [shape: f32[1,32], index: 2, kind: input, shape index: {}]   ;;  %s3105_s3 = inlined_call_operand.vmem [shape: f32[32,128], index: 3, kind: input, shape index: {}]   ;;  %s3106_s4 = inlined_call_operand.vmem [shape: f32[1,128], index: 4, kind: input, shape index: {}]   ;;  %s3107_s5 = inlined_call_operand.hbm [shape: f32[250,128], index: 5, kind: output, shape index: {}]  }
   0x1   :  { %12 = vsyncpa [#allocation3 + $0x1], 0 }
   0x2   :  { %13 = vsyncpa [#allocation4], 0 }
   0x3   :  { %15 = vsyncpa [#allocation4 + $0x1], 0  ;;  %s2498_s18 = smov 0   ;;  %s2500_s19 = smov 0  }
   0x4   :  { %s2502_s20 = smov 0   ;;  %s2504_s21 = smov 0  }
   0x5 LB: > { %s2519_s22 = sadd.s32 4294967295, %s2460_s21   ;;  %s1750_s23 = sadd.s32 4294967294, %s2460_s21   ;;  %s2460_s21 = sphi %s2504_s21, %s3120_s21   ;;  %s2456_s20 = sphi %s2502_s20, %s3119_s20   ;;  %s2452_s19 = sphi %s2500_s19, %s3118_s19   ;;  %s2448_s18 = sphi %s2498_s18, %s3117_s18  }
   0x6   : > { %s2523_s24 = sadd.s32 1, %s2460_s21   ;;  %s28_s25 = sadd.s32 1, %s2456_s20 }
   0x7   : > { %s25_s26 = ssub.s32 %s2460_s21, %s2523_s24  ;;  %p35_p0 = scmp.ne.s32.totalorder %s2456_s20, %s2452_s19 }
   0x8   : > { %p26_p1 = scmp.eq.s32.totalorder %s25_s26, 0  ;;  %p36_p2 = scmp.eq.s32.totalorder %s2460_s21, 0 }
   0x9   : > { %p41_p3 = scmp.ne.s32.totalorder %s2452_s19, %s2448_s18  ;;  %p42_p4 = scmp.eq.s32.totalorder %s2519_s22, 0 }
   0xa   : > { %s2535_s27 = scalar_select %p26_p1, %s2456_s20, %s28_s25  }
   0xb   : > { %p2537_p5 = por %p36_p2, %p35_p0  ;;  %p2541_p6 = por %p42_p4, %p41_p3 }
   0xc   : > { %p149_p7 = scmp.eq.s32.totalorder %s2519_s22, 1  ;;  %p155_p8 = scmp.eq.s32.totalorder %s1750_s23, 1 }
   0xd   : > { %p2198_p10 = scmp.lt.s32.totalorder %s2460_s21, 2  ;;  %s187_s7 = sand.u32 1, %s2456_s20  }
   0xe   : > { %p2548_p11 = por %p149_p7, %p35_p0  ;;  %p2552_p12 = por %p155_p8, %p41_p3 }
   0xf   : > { %s1864_s8 = sshll.u32 %s2460_s21, 14  ;;  %s1753_s9 = sshll.u32 %s187_s7, 10 }
  0x10   : > { %s3111_s30 = scalar_select %p2548_p11, 1, 0 }
  0x11   : > { %s3112_s6 = scalar_select %p2552_p12, 1, 0 }
  0x12   : > { %s2561_s12 = scalar_lea.hbm %s3102_s0, %s1864_s8  ;;  %s191_s13 = scalar_lea.vmem [#allocation2], %s1753_s9 }
  0x13   : > { %s199_s14 = sshll.u32 %s191_s13, 4  ;;  %p2565_p13 = pnand %p2198_p10, %p2537_p5  ;;  %s2569_s14 = int_to_ptr.vmem [resolvable:$true] %s199_s14 }
  0x14   : > { %s2571_s16 = scalar_lea.sflag [#allocation3], %s187_s7  ;;  %s2364_s17 = scalar_lea.hbm %s2561_s12, 16384 }
  0x15   : > { %p2365_p0 = scmp.ne.s32.totalorder %s2561_s12, %s2364_s17  ;;  %p2366_p1 = pneg %p2565_p13 }
  0x16   : > { %s2369_s26 = scalar_lea.hbm %s3102_s0, 32768  ;;  %p2370_p4 = scmp.lt.u32.totalorder %s2561_s12, %s3102_s0 }
  0x17   : > { %p2367_p2 = pnand %p2366_p1, %p2365_p0  ;;  %p2371_p5 = scmp.lt.u32.totalorder %s2369_s26, %s2364_s17 }
  0x18   : > { %p2373_p8 = scmp.lt.u32.totalorder %s2364_s17, %s2561_s12 }
  0x19   : > { %p2368_p3 = pneg %p2367_p2  ;;  %p2372_p7 = por %p2371_p5, %p2370_p4 }
  0x1b   : > { %p2374_p10 = por %p2373_p8, %p2372_p7 }
  0x1d   : > { %p2375_p9 = pnand %p2374_p10, %p2368_p3 }
  0x1f   : > { %2378 = shalt.err (!%p2375_p9)
}
  0x20   : > { %s2379_s7 = scalar_lea.vmem %s2569_s14, 16384  ;;  %s2462_s9 = smov [#allocation2]  }
  0x21   : > { %p2380_p0 = scmp.ne.s32.totalorder %s2569_s14, %s2379_s7  ;;  %s2384_s10 = sshll.u32 %s2462_s9, 4  ;;  %s2385_s10 = int_to_ptr.vmem [resolvable:$false] %s2384_s10 }
  0x22   : > { %s2386_s11 = scalar_lea.vmem %s2385_s10, 32768  ;;  %p2387_p11 = scmp.lt.s32.totalorder %s2569_s14, %s2385_s10 }
  0x23   : > { %p2382_p2 = pnand %p2380_p0, %p2366_p1  ;;  %p2388_p4 = scmp.lt.s32.totalorder %s2386_s11, %s2379_s7 }
  0x25   : > { %p2383_p12 = pneg %p2382_p2  ;;  %p2389_p5 = por %p2388_p4, %p2387_p11 }
  0x27   : > { %p2390_p7 = pnand %p2389_p5, %p2383_p12 }
  0x29   : > { %2393 = shalt.err (!%p2390_p7)
}
  0x2a   : > { %s2463_s13 = smov 1024   ;;  %s2464_s17 = smov 64  }
  0x2b   : > { %2193 = dma.hbm_to_vmem [thread:$0]  (!%p2565_p13), %s2561_s12, 16384, %s2569_s14, %s2571_s16, %s2463_s13, %s2463_s13, %s2464_s17  }
  0x2c   : > { %p1757_p9 = scmp.ge.s32.totalorder %s2460_s21, 1  ;;  %p207_p1 = scmp.lt.s32.totalorder %s2460_s21, 3 }
  0x2e   : > { %p208_p3 = pnand %p1757_p9, %p207_p1 }
  0x2f   : > { %s2602_s23 = sand.u32 (!%p208_p3), 1, %s2452_s19  }
  0x30   : > { %211 = sbr.rel (%p208_p3) target bundleno = 688 (0x2b0), region = 40  ;;  %s1758_s25 = sshll.u32 (!%p208_p3), %s2602_s23, 10 }
  0x31   : > { %s214_s26 = scalar_lea.sflag (!%p208_p3), [#allocation3], %s2602_s23  ;;  %s2606_s28 = scalar_lea.vmem (!%p208_p3), [#allocation2], %s1758_s25 }
  0x37   : > { %2439 = dma.done.wait (%p2541_p6), %s214_s26, 16384  }
  0x38   : > { %2441 = vsyncadd (%p2541_p6), %s214_s26, 4294950912  ;;  %v2236_v0 = vld [vmem:[%s3103_s1 + $0x40] sm:$0xff]   ;;  %v2240_v4 = vld [vmem:[%s3103_s1 + $0x48] sm:$0xff]   ;;  %vm1453_vm0 = vcmask 261120   ;;  %s1759_s17 = sshll.u32 %s2602_s23, 7  ;;  %s1865_s14 = sshll.u32 %s2519_s22, 11 }
  0x39   : > { %v2237_v1 = vld [vmem:[%s3103_s1 + $0xc0] sm:$0xff]   ;;  %1866 = vmatprep.subr.bf16.mxu0 %v2236_v0  ;;  %v2241_v5 = vld [vmem:[%s3103_s1 + $0xc8] sm:$0xff]   ;;  %v2244_v8 = vld [vmem:[%s3103_s1 + $0x50] sm:$0xff]   ;;  %s3033_s12 = scalar_lea.vmem [#allocation5], %s1759_s17  ;;  %s3054_s7 = scalar_lea.hbm %s3107_s5, %s1865_s14 }
  0x3a   : > { %v2238_v2 = vld [vmem:[%s3103_s1] sm:$0xff]   ;;  %1930 = vmatprep.subr.bf16.mxu1 %v2237_v1  ;;  %v2242_v6 = vld [vmem:[%s3103_s1 + $0x8] sm:$0xff]   ;;  %v2245_v9 = vld [vmem:[%s3103_s1 + $0xd0] sm:$0xff]   ;;  %s1677_s15 = sshll.u32 %s3033_s12, 4  ;;  %s1664_s9 = scalar_lea.sflag [#allocation4], %s2602_s23  ;;  %s3056_s15 = int_to_ptr.vmem [resolvable:$true] %s1677_s15 }
  0x3b   : > { %v2239_v3 = vld [vmem:[%s3103_s1 + $0x80] sm:$0xff]   ;;  %1867 = vmatpush3.bf16.msra.mxu0 %v2238_v2  ;;  %v2243_v7 = vld [vmem:[%s3103_s1 + $0x88] sm:$0xff]   ;;  %v2246_v10 = vld [vmem:[%s3103_s1 + $0x10] sm:$0xff]   ;;  %s2394_s10 = scalar_lea.vmem %s3056_s15, 2048  ;;  %p3114_p11 = scmp.ne.s32.totalorder %s3111_s30, 0 }
  0x3c   : > { %1931 = vmatpush3.bf16.msra.mxu1 %v2239_v3  ;;  %1868 = vmatprep.subr.bf16.mxu0 %v2240_v4  ;;  %v2247_v11 = vld [vmem:[%s3103_s1 + $0x90] sm:$0xff]   ;;  %v2248_v12 = vld [vmem:[%s3103_s1 + $0x58] sm:$0xff]   ;;  %v2252_v16 = vld [vmem:[%s3103_s1 + $0x60] sm:$0xff]   ;;  %p2395_p6 = scmp.ne.s32.totalorder %s3056_s15, %s2394_s10  ;;  %s2465_s22 = smov [#allocation5]  }
  0x3d   : > { %1932 = vmatprep.subr.bf16.mxu1 %v2241_v5  ;;  %v2249_v13 = vld [vmem:[%s3103_s1 + $0xd8] sm:$0xff]   ;;  %v2253_v17 = vld [vmem:[%s3103_s1 + $0xe0] sm:$0xff]   ;;  %v2256_v20 = vld [vmem:[%s3103_s1 + $0x68] sm:$0xff]  }
  0x3e   : > { %v2250_v14 = vld [vmem:[%s3103_s1 + $0x18] sm:$0xff]   ;;  %v2254_v18 = vld [vmem:[%s3103_s1 + $0x20] sm:$0xff]   ;;  %v2257_v21 = vld [vmem:[%s3103_s1 + $0xe8] sm:$0xff]   ;;  %p2396_p12 = pnand %p2395_p6, %p3114_p11 }
  0x3f   : > { %1869 = vmatpush3.bf16.msra.mxu0 %v2242_v6  ;;  %v2251_v15 = vld [vmem:[%s3103_s1 + $0x98] sm:$0xff]   ;;  %v2255_v19 = vld [vmem:[%s3103_s1 + $0xa0] sm:$0xff]   ;;  %v2258_v22 = vld [vmem:[%s3103_s1 + $0x28] sm:$0xff]  }
  0x40   : > { %1933 = vmatpush3.bf16.msra.mxu1 %v2243_v7  ;;  %1870 = vmatprep.subr.bf16.mxu0 %v2244_v8  ;;  %v2259_v23 = vld [vmem:[%s3103_s1 + $0xa8] sm:$0xff]   ;;  %v2260_v24 = vld [vmem:[%s3103_s1 + $0x70] sm:$0xff]   ;;  %v2264_v28 = vld [vmem:[%s3103_s1 + $0x78] sm:$0xff]   ;;  %p2397_p13 = pneg %p2396_p12 }
  0x41   : > { %1934 = vmatprep.subr.bf16.mxu1 %v2245_v9  ;;  %v2261_v25 = vld [vmem:[%s3103_s1 + $0xf0] sm:$0xff]   ;;  %v2265_v29 = vld [vmem:[%s3103_s1 + $0xf8] sm:$0xff]   ;;  %v248_v32 = vld [vmem:[%s2606_s28 + $0x8] sm:$0xff] }
  0x42   : > { %v2262_v26 = vld [vmem:[%s3103_s1 + $0x30] sm:$0xff]   ;;  %v2266_v30 = vld [vmem:[%s3103_s1 + $0x38] sm:$0xff]   ;;  %v256_v33 = vld [vmem:[%s2606_s28 + $0x48] sm:$0xff] }
  0x43   : > { %1871 = vmatpush3.bf16.msra.mxu0 %v2246_v10  ;;  %v2263_v27 = vld [vmem:[%s3103_s1 + $0xb0] sm:$0xff]   ;;  %v2267_v31 = vld [vmem:[%s3103_s1 + $0xb8] sm:$0xff]   ;;  %v376_v35 = vpack.c.bf16 %v256_v33, %v248_v32  ;;  %v247_v37 = vld [vmem:[%s2606_s28] sm:$0xff] }
  0x44   : > { %1935 = vmatpush3.bf16.msra.mxu1 %v2247_v11  ;;  %1872 = vmatprep.subr.bf16.mxu0 %v2248_v12  ;;  %v250_v34 = vld [vmem:[%s2606_s28 + $0x18] sm:$0xff]  ;;  %v255_v38 = vld [vmem:[%s2606_s28 + $0x40] sm:$0xff]  ;;  %v249_v41 = vld [vmem:[%s2606_s28 + $0x10] sm:$0xff] }
  0x45   : > { %1936 = vmatprep.subr.bf16.mxu1 %v2249_v13  ;;  %v258_v36 = vld [vmem:[%s2606_s28 + $0x58] sm:$0xff]  ;;  %v375_v40 = vpack.c.bf16 %v255_v38, %v247_v37  ;;  %v257_v42 = vld [vmem:[%s2606_s28 + $0x50] sm:$0xff]  ;;  %990 = vmatprep.mubr.bf16.mxu0 %v376_v35  ;;  %v2268_v44 = vld [vmem:[%s3103_s1 + $0x140] sm:$0xff]  }
  0x46   : > { %v378_v39 = vpack.c.bf16 %v258_v36, %v250_v34  ;;  %v377_v43 = vpack.c.bf16 %v257_v42, %v249_v41  ;;  %v2269_v45 = vld [vmem:[%s3103_s1 + $0x100] sm:$0xff]   ;;  %v264_v48 = vld [vmem:[%s2606_s28 + $0x88] sm:$0xff]  ;;  %v266_v50 = vld [vmem:[%s2606_s28 + $0x98] sm:$0xff] }
  0x47   : > { %1873 = vmatpush3.bf16.msra.mxu0 %v2250_v14  ;;  %v2270_v46 = vld [vmem:[%s3103_s1 + $0x1c0] sm:$0xff]   ;;  %v272_v49 = vld [vmem:[%s2606_s28 + $0xc8] sm:$0xff]  ;;  %v274_v51 = vld [vmem:[%s2606_s28 + $0xd8] sm:$0xff] }
  0x48   : > { %1937 = vmatpush3.bf16.msra.mxu1 %v2251_v15  ;;  %1874 = vmatprep.subr.bf16.mxu0 %v2252_v16  ;;  %v2271_v47 = vld [vmem:[%s3103_s1 + $0x180] sm:$0xff]   ;;  %v384_v52 = vpack.c.bf16 %v272_v49, %v264_v48  ;;  %v386_v53 = vpack.c.bf16 %v274_v51, %v266_v50  ;;  %v265_v56 = vld [vmem:[%s2606_s28 + $0x90] sm:$0xff]  ;;  %v2272_v60 = vld [vmem:[%s3103_s1 + $0x148] sm:$0xff]  }
  0x49   : > { %1938 = vmatprep.subr.bf16.mxu1 %v2253_v17  ;;  %1087 = vmatprep.mubr.bf16.mxu1 %v378_v39  ;;  %v263_v54 = vld [vmem:[%s2606_s28 + $0x80] sm:$0xff]  ;;  %v273_v58 = vld [vmem:[%s2606_s28 + $0xd0] sm:$0xff]  ;;  %v2273_v61 = vld [vmem:[%s3103_s1 + $0x108] sm:$0xff]  }
  0x4a   : > { %v271_v55 = vld [vmem:[%s2606_s28 + $0xc0] sm:$0xff]  ;;  %v385_v59 = vpack.c.bf16 %v273_v58, %v265_v56  ;;  %v2274_v62 = vld [vmem:[%s3103_s1 + $0x1c8] sm:$0xff]   ;;  %v282_v3 = vld [vmem:[%s2606_s28 + $0x118] sm:$0xff] }
  0x4b   : > { %1875 = vmatpush3.bf16.msra.mxu0 %v2254_v18  ;;  %v383_v57 = vpack.c.bf16 %v271_v55, %v263_v54  ;;  %v2275_v63 = vld [vmem:[%s3103_s1 + $0x188] sm:$0xff]   ;;  %v290_v4 = vld [vmem:[%s2606_s28 + $0x158] sm:$0xff]  ;;  %v279_v5 = vld [vmem:[%s2606_s28 + $0x100] sm:$0xff] }
  0x4c   : > { %1939 = vmatpush3.bf16.msra.mxu1 %v2255_v19  ;;  %1876 = vmatprep.subr.bf16.mxu0 %v2256_v20  ;;  %v280_v0 = vld [vmem:[%s2606_s28 + $0x108] sm:$0xff]  ;;  %v394_v6 = vpack.c.bf16 %v290_v4, %v282_v3  ;;  %v287_v7 = vld [vmem:[%s2606_s28 + $0x140] sm:$0xff]  ;;  %v281_v8 = vld [vmem:[%s2606_s28 + $0x110] sm:$0xff] }
  0x4d   : > { %1940 = vmatprep.subr.bf16.mxu1 %v2257_v21  ;;  %v288_v1 = vld [vmem:[%s2606_s28 + $0x148] sm:$0xff]  ;;  %v289_v9 = vld [vmem:[%s2606_s28 + $0x150] sm:$0xff]  ;;  %v391_v10 = vpack.c.bf16 %v287_v7, %v279_v5  ;;  %v298_v18 = vld [vmem:[%s2606_s28 + $0x198] sm:$0xff] }
  0x4e   : > { %v392_v2 = vpack.c.bf16 %v288_v1, %v280_v0  ;;  %v2276_v11 = vld [vmem:[%s3103_s1 + $0x150] sm:$0xff]   ;;  %v393_v12 = vpack.c.bf16 %v289_v9, %v281_v8  ;;  %v296_v16 = vld [vmem:[%s2606_s28 + $0x188] sm:$0xff]  ;;  %v306_v20 = vld [vmem:[%s2606_s28 + $0x1d8] sm:$0xff] }
  0x4f   : > { %1877 = vmatpush3.bf16.msra.mxu0 %v2258_v22  ;;  %v2277_v13 = vld [vmem:[%s3103_s1 + $0x110] sm:$0xff]   ;;  %v304_v17 = vld [vmem:[%s2606_s28 + $0x1c8] sm:$0xff]  ;;  %v295_v21 = vld [vmem:[%s2606_s28 + $0x180] sm:$0xff] }
  0x50   : > { %1941 = vmatpush3.bf16.msra.mxu1 %v2259_v23  ;;  %1878 = vmatprep.subr.bf16.mxu0 %v2260_v24  ;;  %v2278_v14 = vld [vmem:[%s3103_s1 + $0x1d0] sm:$0xff]   ;;  %v400_v19 = vpack.c.bf16 %v304_v17, %v296_v16  ;;  %v303_v22 = vld [vmem:[%s2606_s28 + $0x1c0] sm:$0xff]  ;;  %v402_v23 = vpack.c.bf16 %v306_v20, %v298_v18  ;;  %v312_v32 = vld [vmem:[%s2606_s28 + $0x208] sm:$0xff] }
  0x51   : > { %1942 = vmatprep.subr.bf16.mxu1 %v2261_v25  ;;  %v2279_v15 = vld [vmem:[%s3103_s1 + $0x190] sm:$0xff]   ;;  %v320_v33 = vld [vmem:[%s2606_s28 + $0x248] sm:$0xff]  ;;  %v314_v34 = vld [vmem:[%s2606_s28 + $0x218] sm:$0xff] }
  0x52   : > { %v297_v24 = vld [vmem:[%s2606_s28 + $0x190] sm:$0xff]  ;;  %v322_v35 = vld [vmem:[%s2606_s28 + $0x258] sm:$0xff]  ;;  %v408_v36 = vpack.c.bf16 %v320_v33, %v312_v32  ;;  %v311_v38 = vld [vmem:[%s2606_s28 + $0x200] sm:$0xff] }
  0x53   : > { %1879 = vmatpush3.bf16.msra.mxu0 %v2262_v26  ;;  %v305_v25 = vld [vmem:[%s2606_s28 + $0x1d0] sm:$0xff]  ;;  %v2280_v26 = vld [vmem:[%s3103_s1 + $0x158] sm:$0xff]   ;;  %v410_v37 = vpack.c.bf16 %v322_v35, %v314_v34  ;;  %v319_v39 = vld [vmem:[%s2606_s28 + $0x240] sm:$0xff] }
  0x54   : > { %1943 = vmatpush3.bf16.msra.mxu1 %v2263_v27  ;;  %1880 = vmatprep.subr.bf16.mxu0 %v2264_v28  ;;  %v399_v27 = vpack.c.bf16 %v303_v22, %v295_v21  ;;  %v2281_v28 = vld [vmem:[%s3103_s1 + $0x118] sm:$0xff]   ;;  %v321_v41 = vld [vmem:[%s2606_s28 + $0x250] sm:$0xff]  ;;  %v2284_v42 = vld [vmem:[%s3103_s1 + $0x160] sm:$0xff]  }
  0x55   : > { %1944 = vmatprep.subr.bf16.mxu1 %v2265_v29  ;;  %v401_v29 = vpack.c.bf16 %v305_v25, %v297_v24  ;;  %v328_v48 = vld [vmem:[%s2606_s28 + $0x288] sm:$0xff]  ;;  %v330_v51 = vld [vmem:[%s2606_s28 + $0x298] sm:$0xff]  ;;  %v327_v54 = vld [vmem:[%s2606_s28 + $0x280] sm:$0xff] }
  0x56   : > { %v336_v49 = vld [vmem:[%s2606_s28 + $0x2c8] sm:$0xff]  ;;  %v335_v55 = vld [vmem:[%s2606_s28 + $0x2c0] sm:$0xff]  ;;  %v329_v56 = vld [vmem:[%s2606_s28 + $0x290] sm:$0xff] }
  0x57   : > { %1881 = vmatpush3.bf16.msra.mxu0 %v2266_v30  ;;  %v2282_v30 = vld [vmem:[%s3103_s1 + $0x1d8] sm:$0xff]   ;;  %v416_v50 = vpack.c.bf16 %v336_v49, %v328_v48  ;;  %v2288_v58 = vld [vmem:[%s3103_s1 + $0x168] sm:$0xff]   ;;  %v351_v7 = vld [vmem:[%s2606_s28 + $0x340] sm:$0xff] }
  0x58   : > { %1945 = vmatpush3.bf16.msra.mxu1 %v2267_v31  ;;  %1994 = vmatprep.subr.bf16.mxu0 %v2268_v44  ;;  %v2283_v31 = vld [vmem:[%s3103_s1 + $0x198] sm:$0xff]   ;;  %v407_v44 = vpack.c.bf16 %v319_v39, %v311_v38  ;;  %v352_v0 = vld [vmem:[%s2606_s28 + $0x348] sm:$0xff]  ;;  %v2292_v8 = vld [vmem:[%s3103_s1 + $0x170] sm:$0xff]  }
  0x59   : > { %2058 = vmatprep.subr.bf16.mxu1 %v2270_v46  ;;  %v346_v1 = vld [vmem:[%s2606_s28 + $0x318] sm:$0xff]  ;;  %v345_v9 = vld [vmem:[%s2606_s28 + $0x310] sm:$0xff]  ;;  %v251_v38 = vld [vmem:[%s2606_s28 + $0x20] sm:$0xff] }
  0x5a   : > { %991 = vmatmul.mubr.bf16.vlgmr.msra.gmra.mrb[0].mxu0 %v375_v40  ;;  %v313_v40 = vld [vmem:[%s2606_s28 + $0x210] sm:$0xff]  ;;  %v354_v4 = vld [vmem:[%s2606_s28 + $0x358] sm:$0xff]  ;;  %v259_v39 = vld [vmem:[%s2606_s28 + $0x60] sm:$0xff] }
  0x5b   : > { %1088 = vmatmul.mubr.bf16.vlgmr.msra.gmra.mrb[0].mxu1 %v377_v43  ;;  %1995 = vmatpush3.bf16.msra.mxu0 %v2269_v45  ;;  %v2285_v43 = vld [vmem:[%s3103_s1 + $0x120] sm:$0xff]   ;;  %v409_v46 = vpack.c.bf16 %v321_v41, %v313_v40  ;;  %v426_v5 = vpack.c.bf16 %v354_v4, %v346_v1  ;;  %v362_v16 = vld [vmem:[%s2606_s28 + $0x398] sm:$0xff]  ;;  %v253_v40 = vld [vmem:[%s2606_s28 + $0x30] sm:$0xff] }
  0x5c   : > { %2059 = vmatpush3.bf16.msra.mxu1 %v2271_v47  ;;  %998 = vmatprep.mubr.bf16.mxu0 %v384_v52  ;;  %v2286_v45 = vld [vmem:[%s3103_s1 + $0x1e0] sm:$0xff]   ;;  %v338_v52 = vld [vmem:[%s2606_s28 + $0x2d8] sm:$0xff]  ;;  %v261_v41 = vld [vmem:[%s2606_s28 + $0x70] sm:$0xff] }
  0x5d   : > { %1095 = vmatprep.mubr.bf16.mxu1 %v386_v53  ;;  %1996 = vmatprep.subr.bf16.mxu0 %v2272_v60  ;;  %v2287_v47 = vld [vmem:[%s3103_s1 + $0x1a0] sm:$0xff]   ;;  %v418_v53 = vpack.c.bf16 %v338_v52, %v330_v51  ;;  %v2290_v60 = vld [vmem:[%s3103_s1 + $0x1e8] sm:$0xff]   ;;  %v370_v17 = vld [vmem:[%s2606_s28 + $0x3d8] sm:$0xff] }
  0x5e   : > { %2060 = vmatprep.subr.bf16.mxu1 %v2274_v62  ;;  %v415_v62 = vpack.c.bf16 %v335_v55, %v327_v54  ;;  %v434_v21 = vpack.c.bf16 %v370_v17, %v362_v16  ;;  %v2296_v22 = vld [vmem:[%s3103_s1 + $0x178] sm:$0xff]   ;;  %v275_v51 = vld [vmem:[%s2606_s28 + $0xe0] sm:$0xff]  ;;  %v269_v52 = vld [vmem:[%s2606_s28 + $0xb0] sm:$0xff] }
  0x5f   : > { %1997 = vmatpush3.bf16.msra.mxu0 %v2273_v61  ;;  %v2291_v61 = vld [vmem:[%s3103_s1 + $0x1a8] sm:$0xff]   ;;  %v2297_v24 = vld [vmem:[%s3103_s1 + $0x138] sm:$0xff]   ;;  %v293_v1 = vld [vmem:[%s2606_s28 + $0x170] sm:$0xff] }
  0x60   : > { %2061 = vmatpush3.bf16.msra.mxu1 %v2275_v63  ;;  %1998 = vmatprep.subr.bf16.mxu0 %v2276_v11  ;;  %v344_v63 = vld [vmem:[%s2606_s28 + $0x308] sm:$0xff]  ;;  %v2293_v11 = vld [vmem:[%s3103_s1 + $0x130] sm:$0xff]   ;;  %v2298_v25 = vld [vmem:[%s3103_s1 + $0x1f8] sm:$0xff]  }
  0x61   : > { %2062 = vmatprep.subr.bf16.mxu1 %v2278_v14  ;;  %v424_v3 = vpack.c.bf16 %v352_v0, %v344_v63  ;;  %v360_v14 = vld [vmem:[%s2606_s28 + $0x388] sm:$0xff]  ;;  %v254_v32 = vld [vmem:[%s2606_s28 + $0x38] sm:$0xff]  ;;  %v291_v63 = vld [vmem:[%s2606_s28 + $0x160] sm:$0xff] }
  0x62   : > { %999 = vmatmul.mubr.bf16.gmra.mrb[4].mxu0 %v383_v57  ;;  %v337_v57 = vld [vmem:[%s2606_s28 + $0x2d0] sm:$0xff]  ;;  %v262_v33 = vld [vmem:[%s2606_s28 + $0x78] sm:$0xff]  ;;  %v284_v54 = vld [vmem:[%s2606_s28 + $0x128] sm:$0xff] }
  0x63   : > { %1096 = vmatmul.mubr.bf16.gmra.mrb[4].mxu1 %v385_v59  ;;  %1006 = vmatprep.mubr.bf16.mxu0 %v392_v2  ;;  %v2289_v59 = vld [vmem:[%s3103_s1 + $0x128] sm:$0xff]   ;;  %v417_v2 = vpack.c.bf16 %v337_v57, %v329_v56  ;;  %v286_v56 = vld [vmem:[%s2606_s28 + $0x138] sm:$0xff]  ;;  %v285_v0 = vld [vmem:[%s2606_s28 + $0x130] sm:$0xff] }
  0x64   : > { %1103 = vmatprep.mubr.bf16.mxu1 %v394_v6  ;;  %1999 = vmatpush3.bf16.msra.mxu0 %v2277_v13  ;;  %v343_v6 = vld [vmem:[%s2606_s28 + $0x300] sm:$0xff]  ;;  %v2295_v13 = vld [vmem:[%s3103_s1 + $0x1b0] sm:$0xff]   ;;  %v292_v55 = vld [vmem:[%s2606_s28 + $0x168] sm:$0xff] }
  0x65   : > { %2063 = vmatpush3.bf16.msra.mxu1 %v2279_v15  ;;  %2000 = vmatprep.subr.bf16.mxu0 %v2280_v26  ;;  %v368_v15 = vld [vmem:[%s2606_s28 + $0x3c8] sm:$0xff]  ;;  %v423_v18 = vpack.c.bf16 %v351_v7, %v343_v6  ;;  %v367_v26 = vld [vmem:[%s2606_s28 + $0x3c0] sm:$0xff]  ;;  %v294_v57 = vld [vmem:[%s2606_s28 + $0x178] sm:$0xff]  ;;  %v397_v7 = vpack.c.bf16 %v293_v1, %v285_v0 }
  0x66   : > { %2064 = vmatprep.subr.bf16.mxu1 %v2282_v30  ;;  %v432_v20 = vpack.c.bf16 %v368_v15, %v360_v14  ;;  %v252_v30 = vld [vmem:[%s2606_s28 + $0x28] sm:$0xff]  ;;  %v302_v4 = vld [vmem:[%s2606_s28 + $0x1b8] sm:$0xff]  ;;  %v1442_v0 = vld [vmem:[%s3105_s3] sm:$0xff] }
  0x67   : > { %v316_v14 = vld [vmem:[%s2606_s28 + $0x228] sm:$0xff]  ;;  %v318_v16 = vld [vmem:[%s2606_s28 + $0x238] sm:$0xff] }
  0x68   : > { %2001 = vmatpush3.bf16.msra.mxu0 %v2281_v28  ;;  %v2299_v28 = vld [vmem:[%s3103_s1 + $0x1b8] sm:$0xff]   ;;  %v324_v15 = vld [vmem:[%s2606_s28 + $0x268] sm:$0xff] }
  0x69   : > { %2065 = vmatpush3.bf16.msra.mxu1 %v2283_v31  ;;  %2002 = vmatprep.subr.bf16.mxu0 %v2284_v42  ;;  %v260_v31 = vld [vmem:[%s2606_s28 + $0x68] sm:$0xff]  ;;  %v326_v17 = vld [vmem:[%s2606_s28 + $0x278] sm:$0xff] }
  0x6a   : > { %1007 = vmatmul.mubr.bf16.gmra.mrb[8].mxu0 %v391_v10  ;;  %2066 = vmatprep.subr.bf16.mxu1 %v2286_v45  ;;  %v353_v10 = vld [vmem:[%s2606_s28 + $0x350] sm:$0xff]  ;;  %v268_v42 = vld [vmem:[%s2606_s28 + $0xa8] sm:$0xff]  ;;  %v278_v45 = vld [vmem:[%s2606_s28 + $0xf8] sm:$0xff] }
  0x6b   : > { %1104 = vmatmul.mubr.bf16.gmra.mrb[8].mxu1 %v393_v12  ;;  %1014 = vmatprep.mubr.bf16.mxu0 %v400_v19  ;;  %v2294_v12 = vld [vmem:[%s3103_s1 + $0x1f0] sm:$0xff]   ;;  %v425_v19 = vpack.c.bf16 %v353_v10, %v345_v9  ;;  %v299_v10 = vld [vmem:[%s2606_s28 + $0x1a0] sm:$0xff]  ;;  %v1443_v1 = vld [vmem:[%s3105_s3 + $0x8] sm:$0xff] }
  0x6c   : > { %1111 = vmatprep.mubr.bf16.mxu1 %v402_v23  ;;  %2003 = vmatpush3.bf16.msra.mxu0 %v2285_v43  ;;  %v359_v23 = vld [vmem:[%s2606_s28 + $0x380] sm:$0xff]  ;;  %v276_v43 = vld [vmem:[%s2606_s28 + $0xe8] sm:$0xff] }
  0x6d   : > { %2067 = vmatpush3.bf16.msra.mxu1 %v2287_v47  ;;  %2004 = vmatprep.subr.bf16.mxu0 %v2288_v58  ;;  %v431_v34 = vpack.c.bf16 %v367_v26, %v359_v23  ;;  %v381_v47 = vpack.c.bf16 %v261_v41, %v253_v40  ;;  %v388_v48 = vpack.c.bf16 %v276_v43, %v268_v42  ;;  %v323_v23 = vld [vmem:[%s2606_s28 + $0x260] sm:$0xff]  ;;  %v332_v26 = vld [vmem:[%s2606_s28 + $0x2a8] sm:$0xff]  ;;  %v350_v40 = vld [vmem:[%s2606_s28 + $0x338] sm:$0xff] }
  0x6e   : > { %2068 = vmatprep.subr.bf16.mxu1 %v2290_v60  ;;  %v396_v60 = vpack.c.bf16 %v292_v55, %v284_v54  ;;  %v358_v41 = vld [vmem:[%s2606_s28 + $0x378] sm:$0xff] }
  0x70   : > { %2005 = vmatpush3.bf16.msra.mxu0 %v2289_v59 }
  0x71   : > { %2069 = vmatpush3.bf16.msra.mxu1 %v2291_v61  ;;  %2006 = vmatprep.subr.bf16.mxu0 %v2292_v8  ;;  %v398_v61 = vpack.c.bf16 %v294_v57, %v286_v56 }
  0x72   : > { %1015 = vmatmul.mubr.bf16.gmra.mrb[12].mxu0 %v399_v27  ;;  %2070 = vmatprep.subr.bf16.mxu1 %v2294_v12  ;;  %v361_v27 = vld [vmem:[%s2606_s28 + $0x390] sm:$0xff] }
  0x73   : > { %1112 = vmatmul.mubr.bf16.gmra.mrb[12].mxu1 %v401_v29  ;;  %1022 = vmatprep.mubr.bf16.mxu0 %v408_v36  ;;  %v369_v29 = vld [vmem:[%s2606_s28 + $0x3d0] sm:$0xff]  ;;  %v380_v36 = vpack.c.bf16 %v260_v31, %v252_v30 }
  0x74   : > { %1119 = vmatprep.mubr.bf16.mxu1 %v410_v37  ;;  %2007 = vmatpush3.bf16.msra.mxu0 %v2293_v11  ;;  %v433_v35 = vpack.c.bf16 %v369_v29, %v361_v27  ;;  %v382_v37 = vpack.c.bf16 %v262_v33, %v254_v32  ;;  %v307_v11 = vld [vmem:[%s2606_s28 + $0x1e0] sm:$0xff]  ;;  %v301_v12 = vld [vmem:[%s2606_s28 + $0x1b0] sm:$0xff]  ;;  %v340_v27 = vld [vmem:[%s2606_s28 + $0x2e8] sm:$0xff] }
  0x75   : > { %2071 = vmatpush3.bf16.msra.mxu1 %v2295_v13  ;;  %2008 = vmatprep.subr.bf16.mxu0 %v2296_v22  ;;  %v309_v13 = vld [vmem:[%s2606_s28 + $0x1f0] sm:$0xff]  ;;  %v315_v22 = vld [vmem:[%s2606_s28 + $0x220] sm:$0xff]  ;;  %v342_v29 = vld [vmem:[%s2606_s28 + $0x2f8] sm:$0xff]  ;;  %v420_v32 = vpack.c.bf16 %v340_v27, %v332_v26 }
  0x76   : > { %2072 = vmatprep.subr.bf16.mxu1 %v2298_v25  ;;  %v325_v25 = vld [vmem:[%s2606_s28 + $0x270] sm:$0xff]  ;;  %v411_v30 = vpack.c.bf16 %v323_v23, %v315_v22 }
  0x78   : > { %2009 = vmatpush3.bf16.msra.mxu0 %v2297_v24  ;;  %v317_v24 = vld [vmem:[%s2606_s28 + $0x230] sm:$0xff] }
  0x79   : > { %2073 = vmatpush3.bf16.msra.mxu1 %v2299_v28  ;;  %v334_v28 = vld [vmem:[%s2606_s28 + $0x2b8] sm:$0xff]  ;;  %v413_v31 = vpack.c.bf16 %v325_v25, %v317_v24 }
  0x7a   : > { %1023 = vmatmul.mubr.bf16.gmra.mrb[16].mxu0 %v407_v44  ;;  %v270_v44 = vld [vmem:[%s2606_s28 + $0xb8] sm:$0xff]  ;;  %v422_v33 = vpack.c.bf16 %v342_v29, %v334_v28 }
  0x7b   : > { %1120 = vmatmul.mubr.bf16.gmra.mrb[16].mxu1 %v409_v46  ;;  %1030 = vmatprep.mubr.bf16.mxu0 %v416_v50  ;;  %v379_v46 = vpack.c.bf16 %v259_v39, %v251_v38  ;;  %v390_v49 = vpack.c.bf16 %v278_v45, %v270_v44  ;;  %v267_v50 = vld [vmem:[%s2606_s28 + $0xa0] sm:$0xff]  ;;  %v348_v38 = vld [vmem:[%s2606_s28 + $0x328] sm:$0xff]  ;;  %v430_v45 = vpack.c.bf16 %v358_v41, %v350_v40 }
  0x7c   : > { %1127 = vmatprep.mubr.bf16.mxu1 %v418_v53  ;;  %v277_v53 = vld [vmem:[%s2606_s28 + $0xf0] sm:$0xff]  ;;  %v387_v58 = vpack.c.bf16 %v275_v51, %v267_v50  ;;  %v356_v39 = vld [vmem:[%s2606_s28 + $0x368] sm:$0xff] }
  0x7d   : > { %v389_v59 = vpack.c.bf16 %v277_v53, %v269_v52  ;;  %v428_v44 = vpack.c.bf16 %v356_v39, %v348_v38  ;;  %v364_v50 = vld [vmem:[%s2606_s28 + $0x3a8] sm:$0xff]  ;;  %v366_v52 = vld [vmem:[%s2606_s28 + $0x3b8] sm:$0xff] }
  0x7e   : > { %v372_v51 = vld [vmem:[%s2606_s28 + $0x3e8] sm:$0xff]  ;;  %v374_v53 = vld [vmem:[%s2606_s28 + $0x3f8] sm:$0xff] }
  0x7f   : > { %v436_v56 = vpack.c.bf16 %v372_v51, %v364_v50  ;;  %v438_v57 = vpack.c.bf16 %v374_v53, %v366_v52 }
  0x82   : > { %1031 = vmatmul.mubr.bf16.gmra.mrb[20].mxu0 %v415_v62  ;;  %v283_v62 = vld [vmem:[%s2606_s28 + $0x120] sm:$0xff] }
  0x83   : > { %1128 = vmatmul.mubr.bf16.gmra.mrb[20].mxu1 %v417_v2  ;;  %1038 = vmatprep.mubr.bf16.mxu0 %v424_v3  ;;  %v300_v2 = vld [vmem:[%s2606_s28 + $0x1a8] sm:$0xff]  ;;  %v395_v6 = vpack.c.bf16 %v291_v63, %v283_v62 }
  0x84   : > { %1135 = vmatprep.mubr.bf16.mxu1 %v426_v5  ;;  %v308_v3 = vld [vmem:[%s2606_s28 + $0x1e8] sm:$0xff]  ;;  %v310_v5 = vld [vmem:[%s2606_s28 + $0x1f8] sm:$0xff] }
  0x85   : > { %v404_v8 = vpack.c.bf16 %v308_v3, %v300_v2  ;;  %v406_v9 = vpack.c.bf16 %v310_v5, %v302_v4  ;;  %v2174_v2 = vpack.c.bf16 %v1443_v1, %v1442_v0  ;;  %v1444_v3 = vld [vmem:[%s3105_s3 + $0x10] sm:$0xff]  ;;  %v1445_v4 = vld [vmem:[%s3105_s3 + $0x18] sm:$0xff] }
  0x86   : > { %v2178_v5 = vpack.c.bf16 %v1445_v4, %v1444_v3 }
  0x87   : > { %2175 = vmatprep.subr.bf16.mxu0 %v2174_v2  ;;  %2182 = vmatprep.subr.bf16.mxu1 %v2174_v2 }
  0x8a   : > { %1039 = vmatmul.mubr.bf16.gmra.mrb[24].mxu0 %v423_v18  ;;  %v403_v18 = vpack.c.bf16 %v307_v11, %v299_v10 }
  0x8b   : > { %1136 = vmatmul.mubr.bf16.gmra.mrb[24].mxu1 %v425_v19  ;;  %1046 = vmatprep.mubr.bf16.mxu0 %v432_v20  ;;  %v405_v19 = vpack.c.bf16 %v309_v13, %v301_v12  ;;  %v412_v20 = vpack.c.bf16 %v324_v15, %v316_v14 }
  0x8c   : > { %1143 = vmatprep.mubr.bf16.mxu1 %v434_v21  ;;  %v414_v21 = vpack.c.bf16 %v326_v17, %v318_v16 }
  0x92   : > { %1047 = vmatmul.mubr.bf16.gmra.mrb[28].mxu0 %v431_v34  ;;  %v331_v34 = vld [vmem:[%s2606_s28 + $0x2a0] sm:$0xff] }
  0x93   : > { %1144 = vmatmul.mubr.bf16.gmra.mrb[28].mxu1 %v433_v35  ;;  %1184 = vmatprep.mubr.bf16.mxu0 %v380_v36  ;;  %v339_v35 = vld [vmem:[%s2606_s28 + $0x2e0] sm:$0xff]  ;;  %v333_v36 = vld [vmem:[%s2606_s28 + $0x2b0] sm:$0xff] }
  0x94   : > { %1281 = vmatprep.mubr.bf16.mxu1 %v382_v37  ;;  %v341_v37 = vld [vmem:[%s2606_s28 + $0x2f0] sm:$0xff]  ;;  %v419_v42 = vpack.c.bf16 %v339_v35, %v331_v34 }
  0x95   : > { %v421_v43 = vpack.c.bf16 %v341_v37, %v333_v36 }
  0x9a   : > { %1185 = vmatmul.mubr.bf16.vlgmr.msra.gmra.mrb[32].mxu0 %v379_v46  ;;  %v347_v46 = vld [vmem:[%s2606_s28 + $0x320] sm:$0xff] }
  0x9b   : > { %1282 = vmatmul.mubr.bf16.vlgmr.msra.gmra.mrb[32].mxu1 %v381_v47  ;;  %1192 = vmatprep.mubr.bf16.mxu0 %v388_v48  ;;  %v355_v47 = vld [vmem:[%s2606_s28 + $0x360] sm:$0xff]  ;;  %v349_v48 = vld [vmem:[%s2606_s28 + $0x330] sm:$0xff] }
  0x9c   : > { %1289 = vmatprep.mubr.bf16.mxu1 %v390_v49  ;;  %v357_v49 = vld [vmem:[%s2606_s28 + $0x370] sm:$0xff]  ;;  %v427_v54 = vpack.c.bf16 %v355_v47, %v347_v46  ;;  %2177 = vmatpush3.bf16.msra.mxu0 %v2174_v2 }
  0x9d   : > { %v429_v55 = vpack.c.bf16 %v357_v49, %v349_v48  ;;  %2184 = vmatpush3.bf16.msra.mxu1 %v2174_v2  ;;  %2179 = vmatprep.subr.bf16.mxu0 %v2178_v5 }
  0x9e   : > { %2183 = vmatprep.subr.bf16.mxu1 %v2178_v5 }
  0xa0   : > { %2181 = vmatpush3.bf16.msra.mxu0 %v2178_v5 }
  0xa1   : > { %2185 = vmatpush3.bf16.msra.mxu1 %v2178_v5 }
  0xa2   : > { %1193 = vmatmul.mubr.bf16.gmra.mrb[36].mxu0 %v387_v58  ;;  %v363_v58 = vld [vmem:[%s2606_s28 + $0x3a0] sm:$0xff] }
  0xa3   : > { %1290 = vmatmul.mubr.bf16.gmra.mrb[36].mxu1 %v389_v59  ;;  %1200 = vmatprep.mubr.bf16.mxu0 %v396_v60  ;;  %v371_v59 = vld [vmem:[%s2606_s28 + $0x3e0] sm:$0xff]  ;;  %v365_v60 = vld [vmem:[%s2606_s28 + $0x3b0] sm:$0xff] }
  0xa4   : > { %1297 = vmatprep.mubr.bf16.mxu1 %v398_v61  ;;  %v373_v61 = vld [vmem:[%s2606_s28 + $0x3f0] sm:$0xff]  ;;  %v435_v62 = vpack.c.bf16 %v371_v59, %v363_v58  ;;  %s2398_s28 = sshll.u32 %s2465_s22, 4  ;;  %s2399_s28 = int_to_ptr.vmem [resolvable:$false] %s2398_s28 }
  0xa5   : > { %v437_v63 = vpack.c.bf16 %v373_v61, %v365_v60  ;;  %s2400_s29 = scalar_lea.vmem %s2399_s28, 4096  ;;  %p2401_p8 = scmp.lt.s32.totalorder %s3056_s15, %s2399_s28 }
  0xa6   : > { %p2402_p10 = scmp.lt.s32.totalorder %s2400_s29, %s2394_s10 }
  0xa8   : > { %p2403_p0 = por %p2402_p10, %p2401_p8 }
  0xaa   : > { %1201 = vmatmul.mubr.bf16.gmra.mrb[40].mxu0 %v395_v6  ;;  %p2404_p2 = pnand %p2403_p0, %p2397_p13 }
  0xab   : > { %1298 = vmatmul.mubr.bf16.gmra.mrb[40].mxu1 %v397_v7  ;;  %1208 = vmatprep.mubr.bf16.mxu0 %v404_v8  ;;  %v2947_v8 = vld [vmem:[%s3104_s2] ss:$0 sm:$0xff] }
  0xac   : > { %1305 = vmatprep.mubr.bf16.mxu1 %v406_v9 }
  0xb2   : > { %1209 = vmatmul.mubr.bf16.gmra.mrb[44].mxu0 %v403_v18 }
  0xb3   : > { %1306 = vmatmul.mubr.bf16.gmra.mrb[44].mxu1 %v405_v19  ;;  %1216 = vmatprep.mubr.bf16.mxu0 %v412_v20 }
  0xb4   : > { %1313 = vmatprep.mubr.bf16.mxu1 %v414_v21 }
  0xba   : > { %1217 = vmatmul.mubr.bf16.gmra.mrb[48].mxu0 %v411_v30 }
  0xbb   : > { %1314 = vmatmul.mubr.bf16.gmra.mrb[48].mxu1 %v413_v31  ;;  %1224 = vmatprep.mubr.bf16.mxu0 %v420_v32 }
  0xbc   : > { %1321 = vmatprep.mubr.bf16.mxu1 %v422_v33 }
  0xc2   : > { %1225 = vmatmul.mubr.bf16.gmra.mrb[52].mxu0 %v419_v42 }
  0xc3   : > { %1322 = vmatmul.mubr.bf16.gmra.mrb[52].mxu1 %v421_v43  ;;  %1232 = vmatprep.mubr.bf16.mxu0 %v428_v44 }
  0xc4   : > { %1329 = vmatprep.mubr.bf16.mxu1 %v430_v45 }
  0xca   : > { %1233 = vmatmul.mubr.bf16.gmra.mrb[56].mxu0 %v427_v54 }
  0xcb   : > { %1330 = vmatmul.mubr.bf16.gmra.mrb[56].mxu1 %v429_v55  ;;  %1240 = vmatprep.mubr.bf16.mxu0 %v436_v56 }
  0xcc   : > { %1337 = vmatprep.mubr.bf16.mxu1 %v438_v57 }
  0xd2   : > { %1241 = vmatmul.mubr.bf16.gmra.mrb[60].mxu0 %v435_v62 }
  0xd3   : > { %1338 = vmatmul.mubr.bf16.gmra.mrb[60].mxu1 %v437_v63 }
 0x12d   : > { %v1882_v6 = vpop.f32.mrb[0].mxu0 }
 0x12e   : > { %v1946_v7 = vpop.f32.mrb[0].mxu1  ;;  %v1883_v9 = vpop.f32.mrb[1].mxu0 }
 0x12f   : > { %v1884_v10 = vadd.f32 %v1883_v9, %v1882_v6  ;;  %v1947_v11 = vpop.f32.mrb[1].mxu1  ;;  %v1885_v12 = vpop.f32.mrb[2].mxu0 }
 0x130   : > { %v1948_v13 = vadd.f32 %v1947_v11, %v1946_v7  ;;  %v1949_v14 = vpop.f32.mrb[2].mxu1  ;;  %v1886_v15 = vpop.f32.mrb[3].mxu0 }
 0x131   : > { %v993_v16 = vadd.f32 %v1884_v10, %v2947_v8  ;;  %v1887_v17 = vadd.f32 %v1886_v15, %v1885_v12  ;;  %v1950_v18 = vpop.f32.mrb[3].mxu1 }
 0x132   : > { %v1951_v19 = vadd.f32 %v1950_v18, %v1949_v14 }
 0x133   : > { %v2950_v20 = vadd.f32 %v1948_v13, %v993_v16  ;;  %v996_v21 = vadd.f32 %v1887_v17, %v2947_v8 }
 0x135   : > { %v2953_v22 = vadd.f32 %v1951_v19, %v996_v21  ;;  %v1888_v23 = vpop.f32.mrb[4].mxu0 }
 0x136   : > { %v1952_v24 = vpop.f32.mrb[4].mxu1  ;;  %v1889_v25 = vpop.f32.mrb[5].mxu0 }
 0x137   : > { %v1890_v26 = vadd.f32 %v1889_v25, %v1888_v23  ;;  %v1953_v27 = vpop.f32.mrb[5].mxu1  ;;  %v1891_v28 = vpop.f32.mrb[6].mxu0 }
 0x138   : > { %v1954_v29 = vadd.f32 %v1953_v27, %v1952_v24  ;;  %v1955_v30 = vpop.f32.mrb[6].mxu1  ;;  %v1892_v31 = vpop.f32.mrb[7].mxu0 }
 0x139   : > { %v1001_v32 = vadd.f32 %v1890_v26, %v2947_v8  ;;  %v1893_v33 = vadd.f32 %v1892_v31, %v1891_v28  ;;  %v1956_v34 = vpop.f32.mrb[7].mxu1 }
 0x13a   : > { %v1957_v35 = vadd.f32 %v1956_v34, %v1955_v30 }
 0x13b   : > { %v2956_v36 = vadd.f32 %v1954_v29, %v1001_v32  ;;  %v1004_v37 = vadd.f32 %v1893_v33, %v2947_v8 }
 0x13d   : > { %v2959_v38 = vadd.f32 %v1957_v35, %v1004_v37  ;;  %v1894_v39 = vpop.f32.mrb[8].mxu0 }
 0x13e   : > { %v1958_v40 = vpop.f32.mrb[8].mxu1  ;;  %v1895_v41 = vpop.f32.mrb[9].mxu0 }
 0x13f   : > { %v1896_v42 = vadd.f32 %v1895_v41, %v1894_v39  ;;  %v1959_v43 = vpop.f32.mrb[9].mxu1  ;;  %v1897_v44 = vpop.f32.mrb[10].mxu0 }
 0x140   : > { %v1960_v45 = vadd.f32 %v1959_v43, %v1958_v40  ;;  %v1961_v46 = vpop.f32.mrb[10].mxu1  ;;  %v1898_v47 = vpop.f32.mrb[11].mxu0 }
 0x141   : > { %v1009_v48 = vadd.f32 %v1896_v42, %v2947_v8  ;;  %v1899_v49 = vadd.f32 %v1898_v47, %v1897_v44  ;;  %v1962_v50 = vpop.f32.mrb[11].mxu1 }
 0x142   : > { %v1963_v51 = vadd.f32 %v1962_v50, %v1961_v46 }
 0x143   : > { %v2962_v52 = vadd.f32 %v1960_v45, %v1009_v48  ;;  %v1012_v53 = vadd.f32 %v1899_v49, %v2947_v8 }
 0x145   : > { %v2965_v54 = vadd.f32 %v1963_v51, %v1012_v53  ;;  %v1900_v55 = vpop.f32.mrb[12].mxu0 }
 0x146   : > { %v1964_v56 = vpop.f32.mrb[12].mxu1  ;;  %v1901_v57 = vpop.f32.mrb[13].mxu0 }
 0x147   : > { %v1902_v58 = vadd.f32 %v1901_v57, %v1900_v55  ;;  %v1965_v59 = vpop.f32.mrb[13].mxu1  ;;  %v1903_v60 = vpop.f32.mrb[14].mxu0 }
 0x148   : > { %v1966_v61 = vadd.f32 %v1965_v59, %v1964_v56  ;;  %v1967_v62 = vpop.f32.mrb[14].mxu1  ;;  %v1904_v63 = vpop.f32.mrb[15].mxu0 }
 0x149   : > { %v1017_v0 = vadd.f32 %v1902_v58, %v2947_v8  ;;  %v1905_v1 = vadd.f32 %v1904_v63, %v1903_v60  ;;  %v1968_v2 = vpop.f32.mrb[15].mxu1 }
 0x14a   : > { %v1969_v3 = vadd.f32 %v1968_v2, %v1967_v62 }
 0x14b   : > { %v2968_v4 = vadd.f32 %v1966_v61, %v1017_v0  ;;  %v1020_v5 = vadd.f32 %v1905_v1, %v2947_v8 }
 0x14d   : > { %v2971_v6 = vadd.f32 %v1969_v3, %v1020_v5  ;;  %v1906_v7 = vpop.f32.mrb[16].mxu0 }
 0x14e   : > { %v1970_v9 = vpop.f32.mrb[16].mxu1  ;;  %v1907_v10 = vpop.f32.mrb[17].mxu0 }
 0x14f   : > { %v1908_v11 = vadd.f32 %v1907_v10, %v1906_v7  ;;  %v1971_v12 = vpop.f32.mrb[17].mxu1  ;;  %v1909_v13 = vpop.f32.mrb[18].mxu0 }
 0x150   : > { %v1972_v14 = vadd.f32 %v1971_v12, %v1970_v9  ;;  %v1973_v15 = vpop.f32.mrb[18].mxu1  ;;  %v1910_v16 = vpop.f32.mrb[19].mxu0 }
 0x151   : > { %v1025_v17 = vadd.f32 %v1908_v11, %v2947_v8  ;;  %v1911_v18 = vadd.f32 %v1910_v16, %v1909_v13  ;;  %v1974_v19 = vpop.f32.mrb[19].mxu1 }
 0x152   : > { %v1975_v21 = vadd.f32 %v1974_v19, %v1973_v15 }
 0x153   : > { %v2974_v23 = vadd.f32 %v1972_v14, %v1025_v17  ;;  %v1028_v24 = vadd.f32 %v1911_v18, %v2947_v8 }
 0x155   : > { %v2977_v25 = vadd.f32 %v1975_v21, %v1028_v24  ;;  %v1912_v26 = vpop.f32.mrb[20].mxu0 }
 0x156   : > { %v1976_v27 = vpop.f32.mrb[20].mxu1  ;;  %v1913_v28 = vpop.f32.mrb[21].mxu0 }
 0x157   : > { %v1914_v29 = vadd.f32 %v1913_v28, %v1912_v26  ;;  %v1977_v30 = vpop.f32.mrb[21].mxu1  ;;  %v1915_v31 = vpop.f32.mrb[22].mxu0 }
 0x158   : > { %v1978_v32 = vadd.f32 %v1977_v30, %v1976_v27  ;;  %v1979_v33 = vpop.f32.mrb[22].mxu1  ;;  %v1916_v34 = vpop.f32.mrb[23].mxu0 }
 0x159   : > { %v1033_v35 = vadd.f32 %v1914_v29, %v2947_v8  ;;  %v1917_v37 = vadd.f32 %v1916_v34, %v1915_v31  ;;  %v1980_v39 = vpop.f32.mrb[23].mxu1 }
 0x15a   : > { %v1981_v40 = vadd.f32 %v1980_v39, %v1979_v33 }
 0x15b   : > { %v2980_v41 = vadd.f32 %v1978_v32, %v1033_v35  ;;  %v1036_v42 = vadd.f32 %v1917_v37, %v2947_v8 }
 0x15d   : > { %v2983_v43 = vadd.f32 %v1981_v40, %v1036_v42  ;;  %v1918_v44 = vpop.f32.mrb[24].mxu0 }
 0x15e   : > { %v1982_v45 = vpop.f32.mrb[24].mxu1  ;;  %v1919_v46 = vpop.f32.mrb[25].mxu0 }
 0x15f   : > { %v1920_v47 = vadd.f32 %v1919_v46, %v1918_v44  ;;  %v1983_v48 = vpop.f32.mrb[25].mxu1  ;;  %v1921_v49 = vpop.f32.mrb[26].mxu0 }
 0x160   : > { %v1984_v50 = vadd.f32 %v1983_v48, %v1982_v45  ;;  %v1985_v51 = vpop.f32.mrb[26].mxu1  ;;  %v1922_v53 = vpop.f32.mrb[27].mxu0 }
 0x161   : > { %v1041_v55 = vadd.f32 %v1920_v47, %v2947_v8  ;;  %v1923_v56 = vadd.f32 %v1922_v53, %v1921_v49  ;;  %v1986_v57 = vpop.f32.mrb[27].mxu1 }
 0x162   : > { %v1987_v58 = vadd.f32 %v1986_v57, %v1985_v51 }
 0x163   : > { %v2986_v59 = vadd.f32 %v1984_v50, %v1041_v55  ;;  %v1044_v60 = vadd.f32 %v1923_v56, %v2947_v8 }
 0x165   : > { %v2989_v61 = vadd.f32 %v1987_v58, %v1044_v60  ;;  %v1924_v62 = vpop.f32.mrb[28].mxu0 }
 0x166   : > { %v1988_v63 = vpop.f32.mrb[28].mxu1  ;;  %v1925_v0 = vpop.f32.mrb[29].mxu0 }
 0x167   : > { %v1926_v1 = vadd.f32 %v1925_v0, %v1924_v62  ;;  %v1989_v2 = vpop.f32.mrb[29].mxu1  ;;  %v1927_v3 = vpop.f32.mrb[30].mxu0 }
 0x168   : > { %v1990_v5 = vadd.f32 %v1989_v2, %v1988_v63  ;;  %v1991_v7 = vpop.f32.mrb[30].mxu1  ;;  %v1928_v9 = vpop.f32.mrb[31].mxu0 }
 0x169   : > { %v1049_v10 = vadd.f32 %v1926_v1, %v2947_v8  ;;  %v1929_v11 = vadd.f32 %v1928_v9, %v1927_v3  ;;  %v1992_v12 = vpop.f32.mrb[31].mxu1 }
 0x16a   : > { %v1993_v13 = vadd.f32 %v1992_v12, %v1991_v7 }
 0x16b   : > { %v2992_v14 = vadd.f32 %v1990_v5, %v1049_v10  ;;  %v1052_v15 = vadd.f32 %v1929_v11, %v2947_v8 }
 0x16d   : > { %v2995_v16 = vadd.f32 %v1993_v13, %v1052_v15  ;;  %v2010_v17 = vpop.f32.mrb[32].mxu0 }
 0x16e   : > { %v2074_v18 = vpop.f32.mrb[32].mxu1  ;;  %v2011_v19 = vpop.f32.mrb[33].mxu0 }
 0x16f   : > { %v2012_v21 = vadd.f32 %v2011_v19, %v2010_v17  ;;  %v2075_v24 = vpop.f32.mrb[33].mxu1  ;;  %v2013_v26 = vpop.f32.mrb[34].mxu0 }
 0x170   : > { %v2076_v27 = vadd.f32 %v2075_v24, %v2074_v18  ;;  %v2077_v28 = vpop.f32.mrb[34].mxu1  ;;  %v2014_v29 = vpop.f32.mrb[35].mxu0 }
 0x171   : > { %v1187_v30 = vadd.f32 %v2012_v21, %v2950_v20  ;;  %v2015_v31 = vadd.f32 %v2014_v29, %v2013_v26  ;;  %v2078_v32 = vpop.f32.mrb[35].mxu1 }
 0x172   : > { %v2079_v33 = vadd.f32 %v2078_v32, %v2077_v28 }
 0x173   : > { %v1284_v34 = vadd.f32 %v2076_v27, %v1187_v30  ;;  %v1190_v35 = vadd.f32 %v2015_v31, %v2953_v22 }
 0x175   : > { %v1825_v8 = vmul.f32 -1.442695, %v1284_v34  ;;  %v1287_v37 = vadd.f32 %v2079_v33, %v1190_v35  ;;  %v2016_v39 = vpop.f32.mrb[36].mxu0 }
 0x176   : > { %v2080_v40 = vpop.f32.mrb[36].mxu1  ;;  %v2017_v42 = vpop.f32.mrb[37].mxu0 }
 0x177   : > { %2300 = vpow2.f32 %v1825_v8  ;;  %v1826_v44 = vmul.f32 -1.442695, %v1287_v37  ;;  %v2018_v45 = vadd.f32 %v2017_v42, %v2016_v39  ;;  %v2081_v46 = vpop.f32.mrb[37].mxu1  ;;  %v2019_v47 = vpop.f32.mrb[38].mxu0 }
 0x178   : > { %v2082_v48 = vadd.f32 %v2081_v46, %v2080_v40  ;;  %v2083_v49 = vpop.f32.mrb[38].mxu1  ;;  %v2020_v50 = vpop.f32.mrb[39].mxu0 }
 0x179   : > { %2302 = vpow2.f32 %v1826_v44  ;;  %v1195_v20 = vadd.f32 %v2018_v45, %v2956_v36  ;;  %v2021_v51 = vadd.f32 %v2020_v50, %v2019_v47  ;;  %v2084_v53 = vpop.f32.mrb[39].mxu1 }
 0x17a   : > { %v2085_v55 = vadd.f32 %v2084_v53, %v2083_v49 }
 0x17b   : > { %v1292_v22 = vadd.f32 %v2082_v48, %v1195_v20  ;;  %v1198_v56 = vadd.f32 %v2021_v51, %v2959_v38 }
 0x17d   : > { %v1827_v57 = vmul.f32 -1.442695, %v1292_v22  ;;  %v1295_v58 = vadd.f32 %v2085_v55, %v1198_v56  ;;  %v2022_v60 = vpop.f32.mrb[40].mxu0 }
 0x17e   : > { %v2086_v62 = vpop.f32.mrb[40].mxu1  ;;  %v2023_v63 = vpop.f32.mrb[41].mxu0 }
 0x17f   : > { %2304 = vpow2.f32 %v1827_v57  ;;  %v1828_v0 = vmul.f32 -1.442695, %v1295_v58  ;;  %v2024_v1 = vadd.f32 %v2023_v63, %v2022_v60  ;;  %v2087_v2 = vpop.f32.mrb[41].mxu1  ;;  %v2025_v3 = vpop.f32.mrb[42].mxu0 }
 0x180   : > { %v2088_v5 = vadd.f32 %v2087_v2, %v2086_v62  ;;  %v2089_v7 = vpop.f32.mrb[42].mxu1  ;;  %v2026_v9 = vpop.f32.mrb[43].mxu0 }
 0x181   : > { %v2301_v36 = vpop.eup %2300  ;;  %2306 = vpow2.f32 %v1828_v0  ;;  %v1203_v10 = vadd.f32 %v2024_v1, %v2962_v52  ;;  %v2027_v11 = vadd.f32 %v2026_v9, %v2025_v3  ;;  %v2090_v12 = vpop.f32.mrb[43].mxu1 }
 0x182   : > { %v1394_v38 = vadd.f32 1.0, %v2301_v36  ;;  %v2091_v13 = vadd.f32 %v2090_v12, %v2089_v7 }
 0x183   : > { %v2303_v15 = vpop.eup %2302  ;;  %v1300_v17 = vadd.f32 %v2088_v5, %v1203_v10  ;;  %v1206_v18 = vadd.f32 %v2027_v11, %v2965_v54 }
 0x184   : > { %2308 = vrcp.f32 %v1394_v38  ;;  %v1395_v19 = vadd.f32 1.0, %v2303_v15 }
 0x185   : > { %v1829_v21 = vmul.f32 -1.442695, %v1300_v17  ;;  %v1303_v24 = vadd.f32 %v2091_v13, %v1206_v18  ;;  %v2028_v26 = vpop.f32.mrb[44].mxu0 }
 0x186   : > { %2310 = vrcp.f32 %v1395_v19  ;;  %v2092_v27 = vpop.f32.mrb[44].mxu1  ;;  %v2029_v28 = vpop.f32.mrb[45].mxu0 }
 0x187   : > { %2312 = vpow2.f32 %v1829_v21  ;;  %v1830_v29 = vmul.f32 -1.442695, %v1303_v24  ;;  %v2030_v30 = vadd.f32 %v2029_v28, %v2028_v26  ;;  %v2093_v52 = vpop.f32.mrb[45].mxu1  ;;  %v2031_v31 = vpop.f32.mrb[46].mxu0 }
 0x188   : > { %v2094_v32 = vadd.f32 %v2093_v52, %v2092_v27  ;;  %v2095_v33 = vpop.f32.mrb[46].mxu1  ;;  %v2032_v34 = vpop.f32.mrb[47].mxu0 }
 0x189   : > { %v2305_v35 = vpop.eup %2304  ;;  %2314 = vpow2.f32 %v1830_v29  ;;  %v1211_v54 = vadd.f32 %v2030_v30, %v2968_v4  ;;  %v2033_v8 = vadd.f32 %v2032_v34, %v2031_v31  ;;  %v2096_v37 = vpop.f32.mrb[47].mxu1 }
 0x18a   : > { %v1396_v39 = vadd.f32 1.0, %v2305_v35  ;;  %v2097_v40 = vadd.f32 %v2096_v37, %v2095_v33 }
 0x18b   : > { %v2307_v42 = vpop.eup %2306  ;;  %v1308_v44 = vadd.f32 %v2094_v32, %v1211_v54  ;;  %v1214_v45 = vadd.f32 %v2033_v8, %v2971_v6 }
 0x18c   : > { %2316 = vrcp.f32 %v1396_v39  ;;  %v1397_v46 = vadd.f32 1.0, %v2307_v42 }
 0x18d   : > { %v1831_v47 = vmul.f32 -1.442695, %v1308_v44  ;;  %v1311_v48 = vadd.f32 %v2097_v40, %v1214_v45  ;;  %v2034_v49 = vpop.f32.mrb[48].mxu0 }
 0x18e   : > { %v2309_v50 = vpop.eup %2308  ;;  %2318 = vrcp.f32 %v1397_v46  ;;  %v2098_v20 = vpop.f32.mrb[48].mxu1 }
 0x18f   : > { %v2035_v51 = vpop.f32.mrb[49].mxu0  ;;  %2320 = vpow2.f32 %v1831_v47  ;;  %v1832_v4 = vmul.f32 -1.442695, %v1311_v48  ;;  %v2099_v55 = vpop.f32.mrb[49].mxu1  ;;  %2150 = vmatprep.mubr.msk.f32.mxu0 %vm1453_vm0, %v2309_v50 }
 0x190   : > { %v2036_v53 = vadd.f32 %v2035_v51, %v2034_v49  ;;  %v2037_v22 = vpop.f32.mrb[50].mxu0  ;;  %v2311_v56 = vpop.eup %2310  ;;  %v2100_v57 = vadd.f32 %v2099_v55, %v2098_v20 }
 0x191   : > { %v2101_v6 = vpop.f32.mrb[50].mxu1  ;;  %v2038_v58 = vpop.f32.mrb[51].mxu0  ;;  %2322 = vpow2.f32 %v1832_v4  ;;  %2151 = vmatmul.mubr.msk.f32.vlgmr.msra.gmra.mrb[64].mxu0 %vm1453_vm0, %v2311_v56 }
 0x192   : > { %v2313_v60 = vpop.eup %2312  ;;  %v1219_v62 = vadd.f32 %v2036_v53, %v2974_v23  ;;  %v2039_v63 = vadd.f32 %v2038_v58, %v2037_v22  ;;  %v2102_v0 = vpop.f32.mrb[51].mxu1 }
 0x193   : > { %v1398_v1 = vadd.f32 1.0, %v2313_v60  ;;  %v2103_v2 = vadd.f32 %v2102_v0, %v2101_v6  ;;  %v2315_v3 = vpop.eup %2314 }
 0x194   : > { %v1316_v5 = vadd.f32 %v2100_v57, %v1219_v62  ;;  %v1222_v7 = vadd.f32 %v2039_v63, %v2977_v25  ;;  %v1399_v9 = vadd.f32 1.0, %v2315_v3 }
 0x195   : > { %2324 = vrcp.f32 %v1398_v1  ;;  %v2040_v11 = vpop.f32.mrb[52].mxu0 }
 0x196   : > { %v1833_v36 = vmul.f32 -1.442695, %v1316_v5  ;;  %v1319_v10 = vadd.f32 %v2103_v2, %v1222_v7  ;;  %v2317_v12 = vpop.eup %2316  ;;  %2326 = vrcp.f32 %v1399_v9  ;;  %v2104_v38 = vpop.f32.mrb[52].mxu1 }
 0x197   : > { %v2041_v13 = vpop.f32.mrb[53].mxu0  ;;  %v2105_v17 = vpop.f32.mrb[53].mxu1  ;;  %2153 = vmatprep.mubr.msk.f32.mxu0 %vm1453_vm0, %v2317_v12 }
 0x198   : > { %2328 = vpow2.f32 %v1833_v36  ;;  %v1834_v23 = vmul.f32 -1.442695, %v1319_v10  ;;  %v2042_v15 = vadd.f32 %v2041_v13, %v2040_v11  ;;  %v2043_v18 = vpop.f32.mrb[54].mxu0  ;;  %v2319_v19 = vpop.eup %2318  ;;  %v2106_v21 = vadd.f32 %v2105_v17, %v2104_v38 }
 0x199   : > { %v2107_v24 = vpop.f32.mrb[54].mxu1  ;;  %v2044_v25 = vpop.f32.mrb[55].mxu0  ;;  %2154 = vmatmul.mubr.msk.f32.gmra.mrb[66].mxu0 %vm1453_vm0, %v2319_v19 }
 0x19a   : > { %v2321_v26 = vpop.eup %2320  ;;  %2330 = vpow2.f32 %v1834_v23  ;;  %v1227_v27 = vadd.f32 %v2042_v15, %v2980_v41  ;;  %v2045_v28 = vadd.f32 %v2044_v25, %v2043_v18  ;;  %v2108_v29 = vpop.f32.mrb[55].mxu1 }
 0x19b   : > { %v1400_v30 = vadd.f32 1.0, %v2321_v26  ;;  %v2109_v52 = vadd.f32 %v2108_v29, %v2107_v24  ;;  %v2323_v31 = vpop.eup %2322 }
 0x19c   : > { %v1324_v32 = vadd.f32 %v2106_v21, %v1227_v27  ;;  %v1230_v33 = vadd.f32 %v2045_v28, %v2983_v43  ;;  %v1401_v34 = vadd.f32 1.0, %v2323_v31 }
 0x19d   : > { %2332 = vrcp.f32 %v1400_v30  ;;  %v2046_v8 = vpop.f32.mrb[56].mxu0 }
 0x19e   : > { %v1835_v35 = vmul.f32 -1.442695, %v1324_v32  ;;  %v1327_v54 = vadd.f32 %v2109_v52, %v1230_v33  ;;  %2334 = vrcp.f32 %v1401_v34  ;;  %v2110_v39 = vpop.f32.mrb[56].mxu1  ;;  %v2047_v40 = vpop.f32.mrb[57].mxu0 }
 0x19f   : > { %v2325_v37 = vpop.eup %2324  ;;  %v2048_v42 = vadd.f32 %v2047_v40, %v2046_v8  ;;  %v2111_v44 = vpop.f32.mrb[57].mxu1 }
 0x1a0   : > { %2336 = vpow2.f32 %v1835_v35  ;;  %v1836_v41 = vmul.f32 -1.442695, %v1327_v54  ;;  %v2049_v45 = vpop.f32.mrb[58].mxu0  ;;  %2156 = vmatprep.mubr.msk.f32.mxu0 %vm1453_vm0, %v2325_v37  ;;  %v2327_v46 = vpop.eup %2326  ;;  %v2112_v47 = vadd.f32 %v2111_v44, %v2110_v39  ;;  %v1841_v37 = vld [vmem:[%s3106_s4] ss:$0 sm:$0xff] }
 0x1a1   : > { %v2113_v48 = vpop.f32.mrb[58].mxu1  ;;  %v2050_v43 = vpop.f32.mrb[59].mxu0  ;;  %v1235_v50 = vadd.f32 %v2048_v42, %v2986_v59  ;;  %2157 = vmatmul.mubr.msk.f32.gmra.mrb[68].mxu0 %vm1453_vm0, %v2327_v46 }
 0x1a2   : > { %v2329_v49 = vpop.eup %2328  ;;  %2338 = vpow2.f32 %v1836_v41  ;;  %v2051_v20 = vadd.f32 %v2050_v43, %v2049_v45  ;;  %v2114_v51 = vpop.f32.mrb[59].mxu1 }
 0x1a3   : > { %v1402_v4 = vadd.f32 1.0, %v2329_v49  ;;  %v2115_v53 = vadd.f32 %v2114_v51, %v2113_v48  ;;  %v1332_v22 = vadd.f32 %v2112_v47, %v1235_v50 }
 0x1a4   : > { %v2331_v55 = vpop.eup %2330  ;;  %v1238_v56 = vadd.f32 %v2051_v20, %v2989_v61 }
 0x1a5   : > { %2340 = vrcp.f32 %v1402_v4  ;;  %v1403_v57 = vadd.f32 1.0, %v2331_v55  ;;  %v1837_v6 = vmul.f32 -1.442695, %v1332_v22  ;;  %v2052_v60 = vpop.f32.mrb[60].mxu0 }
 0x1a6   : > { %v1335_v58 = vadd.f32 %v2115_v53, %v1238_v56  ;;  %v2116_v63 = vpop.f32.mrb[60].mxu1  ;;  %v2053_v0 = vpop.f32.mrb[61].mxu0 }
 0x1a7   : > { %v2333_v62 = vpop.eup %2332  ;;  %2342 = vrcp.f32 %v1403_v57  ;;  %v2054_v1 = vadd.f32 %v2053_v0, %v2052_v60  ;;  %v2117_v2 = vpop.f32.mrb[61].mxu1 }
 0x1a8   : > { %2344 = vpow2.f32 %v1837_v6  ;;  %v1838_v59 = vmul.f32 -1.442695, %v1335_v58  ;;  %v2055_v3 = vpop.f32.mrb[62].mxu0  ;;  %2159 = vmatprep.mubr.msk.f32.mxu0 %vm1453_vm0, %v2333_v62  ;;  %v2335_v5 = vpop.eup %2334  ;;  %v2118_v7 = vadd.f32 %v2117_v2, %v2116_v63 }
 0x1a9   : > { %v2119_v9 = vpop.f32.mrb[62].mxu1  ;;  %v2056_v61 = vpop.f32.mrb[63].mxu0  ;;  %v1243_v10 = vadd.f32 %v2054_v1, %v2992_v14  ;;  %2160 = vmatmul.mubr.msk.f32.gmra.mrb[70].mxu0 %vm1453_vm0, %v2335_v5 }
 0x1aa   : > { %v2337_v36 = vpop.eup %2336  ;;  %2346 = vpow2.f32 %v1838_v59  ;;  %v2057_v11 = vadd.f32 %v2056_v61, %v2055_v3  ;;  %v2120_v12 = vpop.f32.mrb[63].mxu1 }
 0x1ab   : > { %v1404_v38 = vadd.f32 1.0, %v2337_v36  ;;  %v2121_v13 = vadd.f32 %v2120_v12, %v2119_v9  ;;  %v1340_v15 = vadd.f32 %v2118_v7, %v1243_v10 }
 0x1ac   : > { %v2339_v23 = vpop.eup %2338  ;;  %v1246_v17 = vadd.f32 %v2057_v11, %v2995_v16 }
 0x1ad   : > { %2348 = vrcp.f32 %v1404_v38  ;;  %v1405_v18 = vadd.f32 1.0, %v2339_v23  ;;  %v1839_v19 = vmul.f32 -1.442695, %v1340_v15 }
 0x1ae   : > { %v1343_v21 = vadd.f32 %v2121_v13, %v1246_v17 }
 0x1af   : > { %v2341_v24 = vpop.eup %2340  ;;  %2350 = vrcp.f32 %v1405_v18 }
 0x1b0   : > { %2352 = vpow2.f32 %v1839_v19  ;;  %v1840_v25 = vmul.f32 -1.442695, %v1343_v21  ;;  %2162 = vmatprep.mubr.msk.f32.mxu1 %vm1453_vm0, %v2341_v24 }
 0x1b1   : > { %v2343_v14 = vpop.eup %2342 }
 0x1b2   : > { %v2345_v26 = vpop.eup %2344  ;;  %2354 = vpow2.f32 %v1840_v25  ;;  %2163 = vmatmul.mubr.msk.f32.vlgmr.msra.gmra.mrb[64].mxu1 %vm1453_vm0, %v2343_v14 }
 0x1b3   : > { %v1406_v27 = vadd.f32 1.0, %v2345_v26 }
 0x1b4   : > { %v2347_v28 = vpop.eup %2346 }
 0x1b5   : > { %2356 = vrcp.f32 %v1406_v27  ;;  %v1407_v29 = vadd.f32 1.0, %v2347_v28 }
 0x1b7   : > { %v2349_v16 = vpop.eup %2348  ;;  %2358 = vrcp.f32 %v1407_v29 }
 0x1b8   : > { %2165 = vmatprep.mubr.msk.f32.mxu1 %vm1453_vm0, %v2349_v16 }
 0x1b9   : > { %v2351_v30 = vpop.eup %2350 }
 0x1ba   : > { %v2353_v52 = vpop.eup %2352  ;;  %2166 = vmatmul.mubr.msk.f32.gmra.mrb[66].mxu1 %vm1453_vm0, %v2351_v30 }
 0x1bb   : > { %v1408_v31 = vadd.f32 1.0, %v2353_v52 }
 0x1bc   : > { %v2355_v32 = vpop.eup %2354 }
 0x1bd   : > { %2360 = vrcp.f32 %v1408_v31  ;;  %v1409_v33 = vadd.f32 1.0, %v2355_v32 }
 0x1bf   : > { %v2357_v34 = vpop.eup %2356  ;;  %2362 = vrcp.f32 %v1409_v33 }
 0x1c0   : > { %2168 = vmatprep.mubr.msk.f32.mxu1 %vm1453_vm0, %v2357_v34 }
 0x1c1   : > { %v2359_v35 = vpop.eup %2358 }
 0x1c2   : > { %2169 = vmatmul.mubr.msk.f32.gmra.mrb[68].mxu1 %vm1453_vm0, %v2359_v35 }
 0x1c7   : > { %v2361_v54 = vpop.eup %2360 }
 0x1c8   : > { %2171 = vmatprep.mubr.msk.f32.mxu1 %vm1453_vm0, %v2361_v54 }
 0x1c9   : > { %v2363_v8 = vpop.eup %2362 }
 0x1ca   : > { %2172 = vmatmul.mubr.msk.f32.gmra.mrb[70].mxu1 %vm1453_vm0, %v2363_v8 }
 0x264   : > { %v2152_v39 = vpop.f32.mrb[64].mxu0 }
 0x265   : > { %v1574_v40 = vadd.f32 %v2152_v39, %v1841_v37  ;;  %v1568_v41 = vpop.f32.mrb[65].mxu0 }
 0x266   : > { %v1569_v42 = vadd.f32 %v1841_v37, %v1568_v41 }
 0x267   : > { %1648 = vst [vmem:[%s3033_s12 + $0x8] sm:$0xff] %v1574_v40 }
 0x268   : > { %1647 = vst [vmem:[%s3033_s12] sm:$0xff] %v1569_v42 }
 0x26c   : > { %v2155_v44 = vpop.f32.mrb[66].mxu0 }
 0x26d   : > { %v1584_v45 = vadd.f32 %v2155_v44, %v1841_v37  ;;  %v1578_v46 = vpop.f32.mrb[67].mxu0 }
 0x26e   : > { %v1579_v47 = vadd.f32 %v1841_v37, %v1578_v46 }
 0x26f   : > { %1650 = vst [vmem:[%s3033_s12 + $0x18] sm:$0xff] %v1584_v45 }
 0x270   : > { %1649 = vst [vmem:[%s3033_s12 + $0x10] sm:$0xff] %v1579_v47 }
 0x274   : > { %v2158_v48 = vpop.f32.mrb[68].mxu0 }
 0x275   : > { %v1594_v43 = vadd.f32 %v2158_v48, %v1841_v37  ;;  %v1588_v49 = vpop.f32.mrb[69].mxu0 }
 0x276   : > { %v1589_v50 = vadd.f32 %v1841_v37, %v1588_v49 }
 0x277   : > { %1652 = vst [vmem:[%s3033_s12 + $0x28] sm:$0xff] %v1594_v43 }
 0x278   : > { %1651 = vst [vmem:[%s3033_s12 + $0x20] sm:$0xff] %v1589_v50 }
 0x27c   : > { %v2161_v20 = vpop.f32.mrb[70].mxu0 }
 0x27d   : > { %v1604_v51 = vadd.f32 %v2161_v20, %v1841_v37  ;;  %v1598_v4 = vpop.f32.mrb[71].mxu0 }
 0x27e   : > { %v1599_v53 = vadd.f32 %v1841_v37, %v1598_v4 }
 0x27f   : > { %1654 = vst [vmem:[%s3033_s12 + $0x38] sm:$0xff] %v1604_v51 }
 0x280   : > { %1653 = vst [vmem:[%s3033_s12 + $0x30] sm:$0xff] %v1599_v53 }
 0x285   : > { %v2164_v55 = vpop.f32.mrb[64].mxu1 }
 0x286   : > { %v1614_v22 = vadd.f32 %v2164_v55, %v1841_v37  ;;  %v1608_v56 = vpop.f32.mrb[65].mxu1 }
 0x287   : > { %v1609_v57 = vadd.f32 %v1841_v37, %v1608_v56 }
 0x288   : > { %1656 = vst [vmem:[%s3033_s12 + $0x48] sm:$0xff] %v1614_v22 }
 0x289   : > { %1655 = vst [vmem:[%s3033_s12 + $0x40] sm:$0xff] %v1609_v57 }
 0x28d   : > { %v2167_v6 = vpop.f32.mrb[66].mxu1 }
 0x28e   : > { %v1624_v58 = vadd.f32 %v2167_v6, %v1841_v37  ;;  %v1618_v60 = vpop.f32.mrb[67].mxu1 }
 0x28f   : > { %v1619_v62 = vadd.f32 %v1841_v37, %v1618_v60 }
 0x290   : > { %1658 = vst [vmem:[%s3033_s12 + $0x58] sm:$0xff] %v1624_v58 }
 0x291   : > { %1657 = vst [vmem:[%s3033_s12 + $0x50] sm:$0xff] %v1619_v62 }
 0x295   : > { %v2170_v63 = vpop.f32.mrb[68].mxu1 }
 0x296   : > { %v1634_v0 = vadd.f32 %v2170_v63, %v1841_v37  ;;  %v1628_v59 = vpop.f32.mrb[69].mxu1 }
 0x297   : > { %v1629_v1 = vadd.f32 %v1841_v37, %v1628_v59 }
 0x298   : > { %1660 = vst [vmem:[%s3033_s12 + $0x68] sm:$0xff] %v1634_v0 }
 0x299   : > { %1659 = vst [vmem:[%s3033_s12 + $0x60] sm:$0xff] %v1629_v1 }
 0x29d   : > { %v2173_v2 = vpop.f32.mrb[70].mxu1 }
 0x29e   : > { %v1644_v3 = vadd.f32 %v2173_v2, %v1841_v37  ;;  %v1638_v5 = vpop.f32.mrb[71].mxu1 }
 0x29f   : > { %v1639_v7 = vadd.f32 %v1841_v37, %v1638_v5 }
 0x2a0   : > { %1662 = vst [vmem:[%s3033_s12 + $0x78] sm:$0xff] %v1644_v3 }
 0x2a1   : > { %1661 = vst [vmem:[%s3033_s12 + $0x70] sm:$0xff] %v1639_v7 }
 0x2a2   : > { %2407 = shalt.err (!%p2404_p2)
}
 0x2a3   : > { %s2408_s11 = scalar_lea.hbm %s3054_s7, 2048  ;;  %s2412_s25 = scalar_lea.hbm %s3107_s5, 4096 }
 0x2a4   : > { %p2409_p4 = scmp.ne.s32.totalorder %s3054_s7, %s2408_s11  ;;  %p2413_p9 = scmp.lt.u32.totalorder %s3054_s7, %s3107_s5 }
 0x2a5   : > { %p2414_p1 = scmp.lt.u32.totalorder %s2412_s25, %s2408_s11  ;;  %p2416_p6 = scmp.lt.u32.totalorder %s2408_s11, %s3054_s7 }
 0x2a6   : > { %p2410_p5 = pnand %p2409_p4, %p3114_p11 }
 0x2a7   : > { %p2415_p3 = por %p2414_p1, %p2413_p9 }
 0x2a8   : > { %p2411_p7 = pneg %p2410_p5 }
 0x2a9   : > { %p2417_p12 = por %p2416_p6, %p2415_p3 }
 0x2ab   : > { %p2418_p13 = pnand %p2417_p12, %p2411_p7 }
 0x2ad   : > { %2421 = shalt.err (!%p2418_p13)
}
 0x2ae   : > { %s2466_s14 = smov 128   ;;  %s2467_s16 = smov 8  }
 0x2af   : > { %2188 = dma.vmem_to_hbm [thread:$0]  (%p3114_p11), %s3056_s15, 2048, %s3054_s7, %s1664_s9, %s2466_s14, %s2466_s14, %s2467_s16  }
 0x2b0 PF: > { %s1692_s8 = sand.u32 1, %s2448_s18   ;;  %p3115_p8 = scmp.ne.s32.totalorder %s3112_s6, 0 }
 0x2b1   : > { %p3116_p10 = scmp.ge.s32.totalorder %s2460_s21, 2  ;;  %s1693_s10 = scalar_lea.sflag [#allocation4], %s1692_s8 }
 0x2b3   : > { %p2195_p0 = pnand %p3116_p10, %p3115_p8 }
 0x2b5   : > { %2443 = dma.done.wait (!%p2195_p0), %s1693_s10, 2048  }
 0x2b6   : > { %2445 = vsyncadd (!%p2195_p0), %s1693_s10, 4294965248  ;;  %p18_p2 = scmp.ge.s32.totalorder %s2523_s24, 4   ;;  %s3117_s18 = smov %s2452_s19 }
 0x2b7   : > { %s3118_s19 = smov %s2456_s20  ;;  %s3119_s20 = smov %s2535_s27 }
 0x2b8   : > { %s3120_s21 = smov %s2523_s24  ;;  %20 = sbr.rel (!%p18_p2) target bundleno = 5 (0x5), region = 85 }
 0x2bf   :  { %1698 = vsyncpa [#allocation3], 1 }
 0x2c0   :  { %1700 = vsyncpa [#allocation3 + $0x1], 1 }
 0x2c1   :  { %1701 = vsyncpa [#allocation4], 1 }
 0x2c2   :  { %1703 = vsyncpa [#allocation4 + $0x1], 1 }

</bundles_post_ra>
